<compile_context>
chip_gen: v7x
topology: tpu7x:2x2x1
jax: 0.10.0
libtpu: 0.0.40
codegen_flags: <defaults>
</compile_context>

<pallas_src>
import functools

import jax
import jax.numpy as jnp
from jax import lax
from jax.experimental import pallas as pl
from jax.experimental.pallas import tpu as pltpu


def _zero_halo_faces(p_ref, D, H, W, C):
    """Zero only the 6 halo faces of a (D+2, H+2, (W+2)*C) padded scratch."""
    WC2 = (W + 2) * C
    zd = jnp.zeros((1, H + 2, WC2), jnp.float32)
    p_ref[0:1, :, :] = zd
    p_ref[D + 1:D + 2, :, :] = zd
    zh = jnp.zeros((D + 2, 1, WC2), jnp.float32)
    p_ref[:, 0:1, :] = zh
    p_ref[:, H + 1:H + 2, :] = zh
    zw = jnp.zeros((D + 2, H + 2, C), jnp.float32)
    p_ref[:, :, 0:C] = zw
    p_ref[:, :, (W + 1) * C:(W + 2) * C] = zw


def _basic_block_kernel(D, H, W, C, TD, x_ref, w1_ref, b1_ref, w2_ref, b2_ref,
                        o_ref, xpad_ref, hpad_ref):
    """Fused BasicBlock forward for one batch element (one grid step).

    x_ref  : (1, D, H, W*C)          input slab
    w*_ref : (9, (W+2)*C, W*C)       per-(kd,kh) block-banded weights, BN folded
    b*_ref : (1, W*C)                folded BN bias, pre-tiled over W
    o_ref  : (1, D, H, W*C)          output slab
    xpad_ref, hpad_ref : (D+2, H+2, (W+2)*C) VMEM scratch (zero halos)
    """
    WCO = W * C
    WC2 = (W + 2) * C
    ROWS = TD * H
    n_tiles = D // TD

    # Halo faces only -- interiors are fully overwritten below, every grid step.
    _zero_halo_faces(xpad_ref, D, H, W, C)
    _zero_halo_faces(hpad_ref, D, H, W, C)

    # Scatter x into the padded conv1 input: one static-window store.
    xpad_ref[1:D + 1, 1:H + 1, C:C + WCO] = x_ref[0]

    # Hoisted bias broadcasts (kept out of the tile loops).
    b1 = jnp.broadcast_to(b1_ref[...], (ROWS, WCO))
    b2 = jnp.broadcast_to(b2_ref[...], (ROWS, WCO))

    def conv_tiles(src_ref, w_ref, emit):
        """acc[(d,h), (w,cout)] = sum_{kd,kh} src[d+kd, h+kh, :] @ w[kd*3+kh]."""
        def body(t, carry):
            d0 = pl.multiple_of(t * TD, TD)
            acc = jnp.zeros((ROWS, WCO), jnp.float32)
            for k in range(9):                       # static 3x3 (kd, kh) taps
                kd, kh = k // 3, k % 3
                lhs = src_ref[pl.ds(d0 + kd, TD), kh:kh + H, :]
                acc = acc + jnp.dot(lhs.reshape(ROWS, WC2), w_ref[k],
                                    preferred_element_type=jnp.float32)
            emit(d0, acc)
            return carry
        lax.fori_loop(0, n_tiles, body, 0, unroll=True)

    # ---- conv1 + BN1 + ReLU -> padded h (VMEM-resident only). ----
    def emit_h(d0, acc):
        hval = jnp.maximum(acc + b1, 0.0)
        hpad_ref[pl.ds(1 + d0, TD), 1:H + 1, C:C + WCO] = hval.reshape(TD, H, WCO)

    conv_tiles(xpad_ref, w1_ref, emit_h)

    # ---- conv2 + BN2 + residual + ReLU -> output slab. ----
    def emit_o(d0, acc):
        res = x_ref[0, pl.ds(d0, TD), :, :].reshape(ROWS, WCO)
        y = jnp.maximum(acc + b2 + res, 0.0)
        o_ref[0, pl.ds(d0, TD), :, :] = y.reshape(TD, H, WCO).astype(o_ref.dtype)

    conv_tiles(hpad_ref, w2_ref, emit_o)


def _banded_weights(w, scale, W):
    """Fold BN scale and the kw tap axis into a block-banded weight matrix.

    w: (3, 3, 3, Cin, Cout).  Returns (9, (W+2)*Cin, W*Cout) where, per (kd,kh),
      M[wp*Cin + ci, wo*Cout + co] = w[kd, kh, wp - wo, ci, co]
    (zero unless 0 <= wp - wo <= 2), so a single MXU push per (kd, kh) covers
    all three kw taps with no in-kernel concatenate/copies.
    """
    w = (w * scale).astype(jnp.float32)            # scale broadcasts over Cout
    _, _, _, cin, cout = w.shape
    mats = []
    for kd in range(3):
        for kh in range(3):
            m = jnp.zeros(((W + 2) * cin, W * cout), jnp.float32)
            for wo in range(W):
                for kw in range(3):
                    wp = wo + kw
                    m = m.at[wp * cin:(wp + 1) * cin,
                             wo * cout:(wo + 1) * cout].set(w[kd, kh, kw])
            mats.append(m)
    return jnp.stack(mats)


def basic_block_forward(x, params):
    """Fused BasicBlock forward (stride=1, downsample=None), NDHWC layout.

    x : (N, D, H, W, C) float32
    params: w1/w2 (3,3,3,C,C), scale1/bias1/scale2/bias2 (C,) folded BN affine.
    """
    N, D, H, W, C = x.shape
    assert params["w1"].shape == (3, 3, 3, C, C), "stride=1 / Cin==Cout path only"
    assert params["w2"].shape == (3, 3, 3, C, C), "stride=1 / Cin==Cout path only"

    WCO = W * C
    WC2 = (W + 2) * C

    w1 = _banded_weights(params["w1"], params["scale1"], W)
    w2 = _banded_weights(params["w2"], params["scale2"], W)
    b1 = jnp.tile(params["bias1"].astype(jnp.float32), W).reshape(1, WCO)
    b2 = jnp.tile(params["bias2"].astype(jnp.float32), W).reshape(1, WCO)

    # Depth tile: target ~256 matmul rows (TD*H) per MXU push, capped by D.
    TD = max(1, min(D, 256 // max(1, H)))
    while D % TD:
        TD -= 1

    x4 = x.reshape(N, D, H, WCO)                   # fold (W, C) -> lane axis

    kernel = functools.partial(_basic_block_kernel, D, H, W, C, TD)

    out = pl.pallas_call(
        kernel,
        out_shape=jax.ShapeDtypeStruct((N, D, H, WCO), jnp.float32),
        grid_spec=pltpu.PrefetchScalarGridSpec(
            num_scalar_prefetch=0,
            grid=(N,),
            in_specs=[
                pl.BlockSpec((1, D, H, WCO), lambda n: (n, 0, 0, 0)),
                pl.BlockSpec((9, WC2, WCO), lambda n: (0, 0, 0)),
                pl.BlockSpec((1, WCO), lambda n: (0, 0)),
                pl.BlockSpec((9, WC2, WCO), lambda n: (0, 0, 0)),
                pl.BlockSpec((1, WCO), lambda n: (0, 0)),
            ],
            out_specs=pl.BlockSpec((1, D, H, WCO), lambda n: (n, 0, 0, 0)),
            scratch_shapes=[
                pltpu.VMEM((D + 2, H + 2, WC2), jnp.float32),   # padded x
                pltpu.VMEM((D + 2, H + 2, WC2), jnp.float32),   # padded conv1 out
            ],
        ),
        compiler_params=pltpu.CompilerParams(
            dimension_semantics=("parallel",)),
    )(x4, w1, b1, w2, b2)

    return out.reshape(N, D, H, W, C)


def _fold_bn(gamma, beta, running_mean, running_var, eps=1e-5):
    scale = gamma / jnp.sqrt(running_var + eps)
    bias = beta - running_mean * scale
    return scale, bias


def _reference_forward(x, params):
    """Pure-JAX reference using lax.conv_general_dilated (NDHWC / DHWIO)."""
    def conv(v, w):
        return jax.lax.conv_general_dilated(
            v, w, window_strides=(1, 1, 1),
            padding=((1, 1), (1, 1), (1, 1)),
            dimension_numbers=("NDHWC", "DHWIO", "NDHWC"))
    h = jnp.maximum(conv(x, params["w1"]) * params["scale1"] + params["bias1"], 0.0)
    y = jnp.maximum(conv(h, params["w2"]) * params["scale2"] + params["bias2"] + x, 0.0)
    return y


if __name__ == "__main__":
    key = jax.random.PRNGKey(0)
    (k_x, k_w1, k_w2, k_g1, k_b1, k_g2, k_b2,
     k_m1, k_v1, k_m2, k_v2) = jax.random.split(key, 11)

    # Small shapes consistent with BasicBlock(in_planes=4, planes=4, stride=1).
    N, C, D, H, W = 2, 4, 8, 8, 8

    x = jax.random.normal(k_x, (N, D, H, W, C), jnp.float32)  # NDHWC

    # conv3x3x3 weights: (kd, kh, kw, Cin, Cout), no bias (as in conv3x3x3).
    fan_in = 3 * 3 * 3 * C
    w1 = jax.random.normal(k_w1, (3, 3, 3, C, C), jnp.float32) * (2.0 / fan_in) ** 0.5
    w2 = jax.random.normal(k_w2, (3, 3, 3, C, C), jnp.float32) * (2.0 / fan_in) ** 0.5

    # BatchNorm3d parameters (eval mode), non-trivial to exercise the folding.
    gamma1 = 1.0 + 0.1 * jax.random.normal(k_g1, (C,), jnp.float32)
    beta1 = 0.1 * jax.random.normal(k_b1, (C,), jnp.float32)
    gamma2 = 1.0 + 0.1 * jax.random.normal(k_g2, (C,), jnp.float32)
    beta2 = 0.1 * jax.random.normal(k_b2, (C,), jnp.float32)
    rmean1 = 0.1 * jax.random.normal(k_m1, (C,), jnp.float32)
    rvar1 = 1.0 + 0.1 * jnp.abs(jax.random.normal(k_v1, (C,), jnp.float32))
    rmean2 = 0.1 * jax.random.normal(k_m2, (C,), jnp.float32)
    rvar2 = 1.0 + 0.1 * jnp.abs(jax.random.normal(k_v2, (C,), jnp.float32))

    scale1, bias1 = _fold_bn(gamma1, beta1, rmean1, rvar1)
    scale2, bias2 = _fold_bn(gamma2, beta2, rmean2, rvar2)

    params = dict(w1=w1, scale1=scale1, bias1=bias1,
                  w2=w2, scale2=scale2, bias2=bias2)

    out = jax.block_until_ready(basic_block_forward(x, params))
    ref = jax.block_until_ready(_reference_forward(x, params))

    assert out.shape == (N, D, H, W, C)
    max_err = float(jnp.max(jnp.abs(out - ref)))
    assert jnp.allclose(out, ref, atol=1e-3, rtol=1e-3), max_err

    print("KERNEL_OK")
</pallas_src>

<mosaic_0001>
module attributes {stable_mosaic.version = 11 : i64} {
  func.func @_basic_block_kernel(%arg0: i32, %arg1: memref<1x8x8x32xf32, #tpu.memory_space<vmem>>, %arg2: memref<9x40x32xf32, #tpu.memory_space<vmem>>, %arg3: memref<1x32xf32, #tpu.memory_space<vmem>>, %arg4: memref<9x40x32xf32, #tpu.memory_space<vmem>>, %arg5: memref<1x32xf32, #tpu.memory_space<vmem>>, %arg6: memref<1x8x8x32xf32, #tpu.memory_space<vmem>>, %arg7: memref<10x10x40xf32, #tpu.memory_space<vmem>>, %arg8: memref<10x10x40xf32, #tpu.memory_space<vmem>>) attributes {dimension_semantics = [#tpu.dimension_semantics<parallel>], iteration_bounds = array<i64: 2>, scalar_prefetch = 0 : i64, scratch_operands = 2 : i64, tpu.core_type = #tpu.core_type<tc>, window_params = [{transform_indices = @transform_0, window_bounds = array<i64: 1, 8, 8, 32>}, {pipeline_mode = #tpu.pipeline_mode<synchronous>, transform_indices = @transform_1, window_bounds = array<i64: 9, 40, 32>}, {pipeline_mode = #tpu.pipeline_mode<synchronous>, transform_indices = @transform_2, window_bounds = array<i64: 1, 32>}, {pipeline_mode = #tpu.pipeline_mode<synchronous>, transform_indices = @transform_3, window_bounds = array<i64: 9, 40, 32>}, {pipeline_mode = #tpu.pipeline_mode<synchronous>, transform_indices = @transform_4, window_bounds = array<i64: 1, 32>}, {transform_indices = @transform_5, window_bounds = array<i64: 1, 8, 8, 32>}]} {
    %cst = arith.constant 0.000000e+00 : f32
    %0 = vector.broadcast %cst : f32 to vector<1x10x40xf32>
    %c0 = arith.constant 0 : index
    %c0_0 = arith.constant 0 : index
    %c0_1 = arith.constant 0 : index
    %1 = vector.load %arg7[%c0, %c0_0, %c0_1] : memref<10x10x40xf32, #tpu.memory_space<vmem>>, vector<1x10x40xf32>
    tpu.vector_store %arg7[%c0, %c0_0, %c0_1], %0 {strides = array<i32>} : memref<10x10x40xf32, #tpu.memory_space<vmem>>, vector<1x10x40xf32>,
    %c9 = arith.constant 9 : index
    %c0_2 = arith.constant 0 : index
    %c0_3 = arith.constant 0 : index
    %2 = vector.load %arg7[%c9, %c0_2, %c0_3] : memref<10x10x40xf32, #tpu.memory_space<vmem>>, vector<1x10x40xf32>
    tpu.vector_store %arg7[%c9, %c0_2, %c0_3], %0 {strides = array<i32>} : memref<10x10x40xf32, #tpu.memory_space<vmem>>, vector<1x10x40xf32>,
    %cst_4 = arith.constant 0.000000e+00 : f32
    %3 = vector.broadcast %cst_4 : f32 to vector<10x1x40xf32>
    %c0_5 = arith.constant 0 : index
    %c0_6 = arith.constant 0 : index
    %c0_7 = arith.constant 0 : index
    %4 = vector.load %arg7[%c0_5, %c0_6, %c0_7] : memref<10x10x40xf32, #tpu.memory_space<vmem>>, vector<10x1x40xf32>
    tpu.vector_store %arg7[%c0_5, %c0_6, %c0_7], %3 {strides = array<i32>} : memref<10x10x40xf32, #tpu.memory_space<vmem>>, vector<10x1x40xf32>,
    %c0_8 = arith.constant 0 : index
    %c9_9 = arith.constant 9 : index
    %c0_10 = arith.constant 0 : index
    %5 = vector.load %arg7[%c0_8, %c9_9, %c0_10] : memref<10x10x40xf32, #tpu.memory_space<vmem>>, vector<10x1x40xf32>
    tpu.vector_store %arg7[%c0_8, %c9_9, %c0_10], %3 {strides = array<i32>} : memref<10x10x40xf32, #tpu.memory_space<vmem>>, vector<10x1x40xf32>,
    %cst_11 = arith.constant 0.000000e+00 : f32
    %6 = vector.broadcast %cst_11 : f32 to vector<10x10x4xf32>
    %c0_12 = arith.constant 0 : index
    %c0_13 = arith.constant 0 : index
    %c0_14 = arith.constant 0 : index
    %7 = vector.load %arg7[%c0_12, %c0_13, %c0_14] : memref<10x10x40xf32, #tpu.memory_space<vmem>>, vector<10x10x4xf32>
    tpu.vector_store %arg7[%c0_12, %c0_13, %c0_14], %6 {strides = array<i32>} : memref<10x10x40xf32, #tpu.memory_space<vmem>>, vector<10x10x4xf32>,
    %c0_15 = arith.constant 0 : index
    %c0_16 = arith.constant 0 : index
    %c36 = arith.constant 36 : index
    %8 = vector.load %arg7[%c0_15, %c0_16, %c36] : memref<10x10x40xf32, #tpu.memory_space<vmem>>, vector<10x10x4xf32>
    tpu.vector_store %arg7[%c0_15, %c0_16, %c36], %6 {strides = array<i32>} : memref<10x10x40xf32, #tpu.memory_space<vmem>>, vector<10x10x4xf32>,
    %cst_17 = arith.constant 0.000000e+00 : f32
    %9 = vector.broadcast %cst_17 : f32 to vector<1x10x40xf32>
    %c0_18 = arith.constant 0 : index
    %c0_19 = arith.constant 0 : index
    %c0_20 = arith.constant 0 : index
    %10 = vector.load %arg8[%c0_18, %c0_19, %c0_20] : memref<10x10x40xf32, #tpu.memory_space<vmem>>, vector<1x10x40xf32>
    tpu.vector_store %arg8[%c0_18, %c0_19, %c0_20], %9 {strides = array<i32>} : memref<10x10x40xf32, #tpu.memory_space<vmem>>, vector<1x10x40xf32>,
    %c9_21 = arith.constant 9 : index
    %c0_22 = arith.constant 0 : index
    %c0_23 = arith.constant 0 : index
    %11 = vector.load %arg8[%c9_21, %c0_22, %c0_23] : memref<10x10x40xf32, #tpu.memory_space<vmem>>, vector<1x10x40xf32>
    tpu.vector_store %arg8[%c9_21, %c0_22, %c0_23], %9 {strides = array<i32>} : memref<10x10x40xf32, #tpu.memory_space<vmem>>, vector<1x10x40xf32>,
    %cst_24 = arith.constant 0.000000e+00 : f32
    %12 = vector.broadcast %cst_24 : f32 to vector<10x1x40xf32>
    %c0_25 = arith.constant 0 : index
    %c0_26 = arith.constant 0 : index
    %c0_27 = arith.constant 0 : index
    %13 = vector.load %arg8[%c0_25, %c0_26, %c0_27] : memref<10x10x40xf32, #tpu.memory_space<vmem>>, vector<10x1x40xf32>
    tpu.vector_store %arg8[%c0_25, %c0_26, %c0_27], %12 {strides = array<i32>} : memref<10x10x40xf32, #tpu.memory_space<vmem>>, vector<10x1x40xf32>,
    %c0_28 = arith.constant 0 : index
    %c9_29 = arith.constant 9 : index
    %c0_30 = arith.constant 0 : index
    %14 = vector.load %arg8[%c0_28, %c9_29, %c0_30] : memref<10x10x40xf32, #tpu.memory_space<vmem>>, vector<10x1x40xf32>
    tpu.vector_store %arg8[%c0_28, %c9_29, %c0_30], %12 {strides = array<i32>} : memref<10x10x40xf32, #tpu.memory_space<vmem>>, vector<10x1x40xf32>,
    %cst_31 = arith.constant 0.000000e+00 : f32
    %15 = vector.broadcast %cst_31 : f32 to vector<10x10x4xf32>
    %c0_32 = arith.constant 0 : index
    %c0_33 = arith.constant 0 : index
    %c0_34 = arith.constant 0 : index
    %16 = vector.load %arg8[%c0_32, %c0_33, %c0_34] : memref<10x10x40xf32, #tpu.memory_space<vmem>>, vector<10x10x4xf32>
    tpu.vector_store %arg8[%c0_32, %c0_33, %c0_34], %15 {strides = array<i32>} : memref<10x10x40xf32, #tpu.memory_space<vmem>>, vector<10x10x4xf32>,
    %c0_35 = arith.constant 0 : index
    %c0_36 = arith.constant 0 : index
    %c36_37 = arith.constant 36 : index
    %17 = vector.load %arg8[%c0_35, %c0_36, %c36_37] : memref<10x10x40xf32, #tpu.memory_space<vmem>>, vector<10x10x4xf32>
    tpu.vector_store %arg8[%c0_35, %c0_36, %c36_37], %15 {strides = array<i32>} : memref<10x10x40xf32, #tpu.memory_space<vmem>>, vector<10x10x4xf32>,
    %c0_38 = arith.constant 0 : index
    %c0_39 = arith.constant 0 : index
    %c0_40 = arith.constant 0 : index
    %c0_41 = arith.constant 0 : index
    %18 = vector.load %arg1[%c0_38, %c0_39, %c0_40, %c0_41] : memref<1x8x8x32xf32, #tpu.memory_space<vmem>>, vector<1x8x8x32xf32>
    %19 = vector.shape_cast %18 : vector<1x8x8x32xf32> to vector<8x8x32xf32>
    %c1 = arith.constant 1 : index
    %c1_42 = arith.constant 1 : index
    %c4 = arith.constant 4 : index
    %20 = vector.load %arg7[%c1, %c1_42, %c4] : memref<10x10x40xf32, #tpu.memory_space<vmem>>, vector<8x8x32xf32>
    tpu.vector_store %arg7[%c1, %c1_42, %c4], %19 {strides = array<i32>} : memref<10x10x40xf32, #tpu.memory_space<vmem>>, vector<8x8x32xf32>,
    %c0_43 = arith.constant 0 : index
    %c0_44 = arith.constant 0 : index
    %21 = vector.load %arg3[%c0_43, %c0_44] : memref<1x32xf32, #tpu.memory_space<vmem>>, vector<1x32xf32>
    %22 = vector.shape_cast %21 : vector<1x32xf32> to vector<1x32xf32>
    %23 = vector.broadcast %22 : vector<1x32xf32> to vector<64x32xf32>
    %c0_45 = arith.constant 0 : index
    %c0_46 = arith.constant 0 : index
    %24 = vector.load %arg5[%c0_45, %c0_46] : memref<1x32xf32, #tpu.memory_space<vmem>>, vector<1x32xf32>
    %25 = vector.shape_cast %24 : vector<1x32xf32> to vector<1x32xf32>
    %26 = vector.broadcast %25 : vector<1x32xf32> to vector<64x32xf32>
    %c0_i32 = arith.constant 0 : i32
    %c8_i32 = arith.constant 8 : i32
    %27 = arith.muli %c0_i32, %c8_i32 : i32
    %28 = tpu.assume_multiple %27, 8 : i32
    %cst_47 = arith.constant 0.000000e+00 : f32
    %29 = vector.broadcast %cst_47 : f32 to vector<64x32xf32>
    %c0_i32_48 = arith.constant 0 : i32
    %30 = arith.addi %28, %c0_i32_48 : i32
    %31 = arith.index_cast %30 : i32 to index
    %c0_49 = arith.constant 0 : index
    %c0_50 = arith.constant 0 : index
    %32 = vector.load %arg7[%31, %c0_49, %c0_50] : memref<10x10x40xf32, #tpu.memory_space<vmem>>, vector<8x8x40xf32>
    %33 = vector.shape_cast %32 : vector<8x8x40xf32> to vector<64x40xf32>
    %c0_51 = arith.constant 0 : index
    %c0_52 = arith.constant 0 : index
    %c0_53 = arith.constant 0 : index
    %34 = vector.load %arg2[%c0_51, %c0_52, %c0_53] : memref<9x40x32xf32, #tpu.memory_space<vmem>>, vector<1x40x32xf32>
    %35 = vector.shape_cast %34 : vector<1x40x32xf32> to vector<40x32xf32>
    %cst_54 = arith.constant dense<0.000000e+00> : vector<64x32xf32>
    %36 = tpu.matmul %33, %35, %cst_54 {dimension_numbers = #tpu.dot_dimension_numbers<[1], [0], [0], [1], [0, 0, 1, 1], [], []>} : vector<64x40xf32>, vector<40x32xf32>, vector<64x32xf32> -> vector<64x32xf32>
    %37 = arith.addf %29, %36 : vector<64x32xf32>
    %c0_i32_55 = arith.constant 0 : i32
    %38 = arith.addi %28, %c0_i32_55 : i32
    %39 = arith.index_cast %38 : i32 to index
    %c1_56 = arith.constant 1 : index
    %c0_57 = arith.constant 0 : index
    %40 = vector.load %arg7[%39, %c1_56, %c0_57] : memref<10x10x40xf32, #tpu.memory_space<vmem>>, vector<8x8x40xf32>
    %41 = vector.shape_cast %40 : vector<8x8x40xf32> to vector<64x40xf32>
    %c1_58 = arith.constant 1 : index
    %c0_59 = arith.constant 0 : index
    %c0_60 = arith.constant 0 : index
    %42 = vector.load %arg2[%c1_58, %c0_59, %c0_60] : memref<9x40x32xf32, #tpu.memory_space<vmem>>, vector<1x40x32xf32>
    %43 = vector.shape_cast %42 : vector<1x40x32xf32> to vector<40x32xf32>
    %cst_61 = arith.constant dense<0.000000e+00> : vector<64x32xf32>
    %44 = tpu.matmul %41, %43, %cst_61 {dimension_numbers = #tpu.dot_dimension_numbers<[1], [0], [0], [1], [0, 0, 1, 1], [], []>} : vector<64x40xf32>, vector<40x32xf32>, vector<64x32xf32> -> vector<64x32xf32>
    %45 = arith.addf %37, %44 : vector<64x32xf32>
    %c0_i32_62 = arith.constant 0 : i32
    %46 = arith.addi %28, %c0_i32_62 : i32
    %47 = arith.index_cast %46 : i32 to index
    %c2 = arith.constant 2 : index
    %c0_63 = arith.constant 0 : index
    %48 = vector.load %arg7[%47, %c2, %c0_63] : memref<10x10x40xf32, #tpu.memory_space<vmem>>, vector<8x8x40xf32>
    %49 = vector.shape_cast %48 : vector<8x8x40xf32> to vector<64x40xf32>
    %c2_64 = arith.constant 2 : index
    %c0_65 = arith.constant 0 : index
    %c0_66 = arith.constant 0 : index
    %50 = vector.load %arg2[%c2_64, %c0_65, %c0_66] : memref<9x40x32xf32, #tpu.memory_space<vmem>>, vector<1x40x32xf32>
    %51 = vector.shape_cast %50 : vector<1x40x32xf32> to vector<40x32xf32>
    %cst_67 = arith.constant dense<0.000000e+00> : vector<64x32xf32>
    %52 = tpu.matmul %49, %51, %cst_67 {dimension_numbers = #tpu.dot_dimension_numbers<[1], [0], [0], [1], [0, 0, 1, 1], [], []>} : vector<64x40xf32>, vector<40x32xf32>, vector<64x32xf32> -> vector<64x32xf32>
    %53 = arith.addf %45, %52 : vector<64x32xf32>
    %c1_i32 = arith.constant 1 : i32
    %54 = arith.addi %28, %c1_i32 : i32
    %55 = arith.index_cast %54 : i32 to index
    %c0_68 = arith.constant 0 : index
    %c0_69 = arith.constant 0 : index
    %56 = vector.load %arg7[%55, %c0_68, %c0_69] : memref<10x10x40xf32, #tpu.memory_space<vmem>>, vector<8x8x40xf32>
    %57 = vector.shape_cast %56 : vector<8x8x40xf32> to vector<64x40xf32>
    %c3 = arith.constant 3 : index
    %c0_70 = arith.constant 0 : index
    %c0_71 = arith.constant 0 : index
    %58 = vector.load %arg2[%c3, %c0_70, %c0_71] : memref<9x40x32xf32, #tpu.memory_space<vmem>>, vector<1x40x32xf32>
    %59 = vector.shape_cast %58 : vector<1x40x32xf32> to vector<40x32xf32>
    %cst_72 = arith.constant dense<0.000000e+00> : vector<64x32xf32>
    %60 = tpu.matmul %57, %59, %cst_72 {dimension_numbers = #tpu.dot_dimension_numbers<[1], [0], [0], [1], [0, 0, 1, 1], [], []>} : vector<64x40xf32>, vector<40x32xf32>, vector<64x32xf32> -> vector<64x32xf32>
    %61 = arith.addf %53, %60 : vector<64x32xf32>
    %c1_i32_73 = arith.constant 1 : i32
    %62 = arith.addi %28, %c1_i32_73 : i32
    %63 = arith.index_cast %62 : i32 to index
    %c1_74 = arith.constant 1 : index
    %c0_75 = arith.constant 0 : index
    %64 = vector.load %arg7[%63, %c1_74, %c0_75] : memref<10x10x40xf32, #tpu.memory_space<vmem>>, vector<8x8x40xf32>
    %65 = vector.shape_cast %64 : vector<8x8x40xf32> to vector<64x40xf32>
    %c4_76 = arith.constant 4 : index
    %c0_77 = arith.constant 0 : index
    %c0_78 = arith.constant 0 : index
    %66 = vector.load %arg2[%c4_76, %c0_77, %c0_78] : memref<9x40x32xf32, #tpu.memory_space<vmem>>, vector<1x40x32xf32>
    %67 = vector.shape_cast %66 : vector<1x40x32xf32> to vector<40x32xf32>
    %cst_79 = arith.constant dense<0.000000e+00> : vector<64x32xf32>
    %68 = tpu.matmul %65, %67, %cst_79 {dimension_numbers = #tpu.dot_dimension_numbers<[1], [0], [0], [1], [0, 0, 1, 1], [], []>} : vector<64x40xf32>, vector<40x32xf32>, vector<64x32xf32> -> vector<64x32xf32>
    %69 = arith.addf %61, %68 : vector<64x32xf32>
    %c1_i32_80 = arith.constant 1 : i32
    %70 = arith.addi %28, %c1_i32_80 : i32
    %71 = arith.index_cast %70 : i32 to index
    %c2_81 = arith.constant 2 : index
    %c0_82 = arith.constant 0 : index
    %72 = vector.load %arg7[%71, %c2_81, %c0_82] : memref<10x10x40xf32, #tpu.memory_space<vmem>>, vector<8x8x40xf32>
    %73 = vector.shape_cast %72 : vector<8x8x40xf32> to vector<64x40xf32>
    %c5 = arith.constant 5 : index
    %c0_83 = arith.constant 0 : index
    %c0_84 = arith.constant 0 : index
    %74 = vector.load %arg2[%c5, %c0_83, %c0_84] : memref<9x40x32xf32, #tpu.memory_space<vmem>>, vector<1x40x32xf32>
    %75 = vector.shape_cast %74 : vector<1x40x32xf32> to vector<40x32xf32>
    %cst_85 = arith.constant dense<0.000000e+00> : vector<64x32xf32>
    %76 = tpu.matmul %73, %75, %cst_85 {dimension_numbers = #tpu.dot_dimension_numbers<[1], [0], [0], [1], [0, 0, 1, 1], [], []>} : vector<64x40xf32>, vector<40x32xf32>, vector<64x32xf32> -> vector<64x32xf32>
    %77 = arith.addf %69, %76 : vector<64x32xf32>
    %c2_i32 = arith.constant 2 : i32
    %78 = arith.addi %28, %c2_i32 : i32
    %79 = arith.index_cast %78 : i32 to index
    %c0_86 = arith.constant 0 : index
    %c0_87 = arith.constant 0 : index
    %80 = vector.load %arg7[%79, %c0_86, %c0_87] : memref<10x10x40xf32, #tpu.memory_space<vmem>>, vector<8x8x40xf32>
    %81 = vector.shape_cast %80 : vector<8x8x40xf32> to vector<64x40xf32>
    %c6 = arith.constant 6 : index
    %c0_88 = arith.constant 0 : index
    %c0_89 = arith.constant 0 : index
    %82 = vector.load %arg2[%c6, %c0_88, %c0_89] : memref<9x40x32xf32, #tpu.memory_space<vmem>>, vector<1x40x32xf32>
    %83 = vector.shape_cast %82 : vector<1x40x32xf32> to vector<40x32xf32>
    %cst_90 = arith.constant dense<0.000000e+00> : vector<64x32xf32>
    %84 = tpu.matmul %81, %83, %cst_90 {dimension_numbers = #tpu.dot_dimension_numbers<[1], [0], [0], [1], [0, 0, 1, 1], [], []>} : vector<64x40xf32>, vector<40x32xf32>, vector<64x32xf32> -> vector<64x32xf32>
    %85 = arith.addf %77, %84 : vector<64x32xf32>
    %c2_i32_91 = arith.constant 2 : i32
    %86 = arith.addi %28, %c2_i32_91 : i32
    %87 = arith.index_cast %86 : i32 to index
    %c1_92 = arith.constant 1 : index
    %c0_93 = arith.constant 0 : index
    %88 = vector.load %arg7[%87, %c1_92, %c0_93] : memref<10x10x40xf32, #tpu.memory_space<vmem>>, vector<8x8x40xf32>
    %89 = vector.shape_cast %88 : vector<8x8x40xf32> to vector<64x40xf32>
    %c7 = arith.constant 7 : index
    %c0_94 = arith.constant 0 : index
    %c0_95 = arith.constant 0 : index
    %90 = vector.load %arg2[%c7, %c0_94, %c0_95] : memref<9x40x32xf32, #tpu.memory_space<vmem>>, vector<1x40x32xf32>
    %91 = vector.shape_cast %90 : vector<1x40x32xf32> to vector<40x32xf32>
    %cst_96 = arith.constant dense<0.000000e+00> : vector<64x32xf32>
    %92 = tpu.matmul %89, %91, %cst_96 {dimension_numbers = #tpu.dot_dimension_numbers<[1], [0], [0], [1], [0, 0, 1, 1], [], []>} : vector<64x40xf32>, vector<40x32xf32>, vector<64x32xf32> -> vector<64x32xf32>
    %93 = arith.addf %85, %92 : vector<64x32xf32>
    %c2_i32_97 = arith.constant 2 : i32
    %94 = arith.addi %28, %c2_i32_97 : i32
    %95 = arith.index_cast %94 : i32 to index
    %c2_98 = arith.constant 2 : index
    %c0_99 = arith.constant 0 : index
    %96 = vector.load %arg7[%95, %c2_98, %c0_99] : memref<10x10x40xf32, #tpu.memory_space<vmem>>, vector<8x8x40xf32>
    %97 = vector.shape_cast %96 : vector<8x8x40xf32> to vector<64x40xf32>
    %c8 = arith.constant 8 : index
    %c0_100 = arith.constant 0 : index
    %c0_101 = arith.constant 0 : index
    %98 = vector.load %arg2[%c8, %c0_100, %c0_101] : memref<9x40x32xf32, #tpu.memory_space<vmem>>, vector<1x40x32xf32>
    %99 = vector.shape_cast %98 : vector<1x40x32xf32> to vector<40x32xf32>
    %cst_102 = arith.constant dense<0.000000e+00> : vector<64x32xf32>
    %100 = tpu.matmul %97, %99, %cst_102 {dimension_numbers = #tpu.dot_dimension_numbers<[1], [0], [0], [1], [0, 0, 1, 1], [], []>} : vector<64x40xf32>, vector<40x32xf32>, vector<64x32xf32> -> vector<64x32xf32>
    %101 = arith.addf %93, %100 : vector<64x32xf32>
    %102 = arith.addf %101, %23 : vector<64x32xf32>
    %cst_103 = arith.constant 0.000000e+00 : f32
    %103 = vector.broadcast %cst_103 : f32 to vector<64x32xf32>
    %104 = arith.maximumf %102, %103 : vector<64x32xf32>
    %105 = vector.shape_cast %104 : vector<64x32xf32> to vector<8x8x32xf32>
    %c1_i32_104 = arith.constant 1 : i32
    %106 = arith.addi %c1_i32_104, %28 : i32
    %107 = arith.index_cast %106 : i32 to index
    %c1_105 = arith.constant 1 : index
    %c4_106 = arith.constant 4 : index
    %108 = vector.load %arg8[%107, %c1_105, %c4_106] : memref<10x10x40xf32, #tpu.memory_space<vmem>>, vector<8x8x32xf32>
    tpu.vector_store %arg8[%107, %c1_105, %c4_106], %105 {strides = array<i32>} : memref<10x10x40xf32, #tpu.memory_space<vmem>>, vector<8x8x32xf32>,
    %c1_i32_107 = arith.constant 1 : i32
    %c0_i32_108 = arith.constant 0 : i32
    %c8_i32_109 = arith.constant 8 : i32
    %109 = arith.muli %c0_i32_108, %c8_i32_109 : i32
    %110 = tpu.assume_multiple %109, 8 : i32
    %cst_110 = arith.constant 0.000000e+00 : f32
    %111 = vector.broadcast %cst_110 : f32 to vector<64x32xf32>
    %c0_i32_111 = arith.constant 0 : i32
    %112 = arith.addi %110, %c0_i32_111 : i32
    %113 = arith.index_cast %112 : i32 to index
    %c0_112 = arith.constant 0 : index
    %c0_113 = arith.constant 0 : index
    %114 = vector.load %arg8[%113, %c0_112, %c0_113] : memref<10x10x40xf32, #tpu.memory_space<vmem>>, vector<8x8x40xf32>
    %115 = vector.shape_cast %114 : vector<8x8x40xf32> to vector<64x40xf32>
    %c0_114 = arith.constant 0 : index
    %c0_115 = arith.constant 0 : index
    %c0_116 = arith.constant 0 : index
    %116 = vector.load %arg4[%c0_114, %c0_115, %c0_116] : memref<9x40x32xf32, #tpu.memory_space<vmem>>, vector<1x40x32xf32>
    %117 = vector.shape_cast %116 : vector<1x40x32xf32> to vector<40x32xf32>
    %cst_117 = arith.constant dense<0.000000e+00> : vector<64x32xf32>
    %118 = tpu.matmul %115, %117, %cst_117 {dimension_numbers = #tpu.dot_dimension_numbers<[1], [0], [0], [1], [0, 0, 1, 1], [], []>} : vector<64x40xf32>, vector<40x32xf32>, vector<64x32xf32> -> vector<64x32xf32>
    %119 = arith.addf %111, %118 : vector<64x32xf32>
    %c0_i32_118 = arith.constant 0 : i32
    %120 = arith.addi %110, %c0_i32_118 : i32
    %121 = arith.index_cast %120 : i32 to index
    %c1_119 = arith.constant 1 : index
    %c0_120 = arith.constant 0 : index
    %122 = vector.load %arg8[%121, %c1_119, %c0_120] : memref<10x10x40xf32, #tpu.memory_space<vmem>>, vector<8x8x40xf32>
    %123 = vector.shape_cast %122 : vector<8x8x40xf32> to vector<64x40xf32>
    %c1_121 = arith.constant 1 : index
    %c0_122 = arith.constant 0 : index
    %c0_123 = arith.constant 0 : index
    %124 = vector.load %arg4[%c1_121, %c0_122, %c0_123] : memref<9x40x32xf32, #tpu.memory_space<vmem>>, vector<1x40x32xf32>
    %125 = vector.shape_cast %124 : vector<1x40x32xf32> to vector<40x32xf32>
    %cst_124 = arith.constant dense<0.000000e+00> : vector<64x32xf32>
    %126 = tpu.matmul %123, %125, %cst_124 {dimension_numbers = #tpu.dot_dimension_numbers<[1], [0], [0], [1], [0, 0, 1, 1], [], []>} : vector<64x40xf32>, vector<40x32xf32>, vector<64x32xf32> -> vector<64x32xf32>
    %127 = arith.addf %119, %126 : vector<64x32xf32>
    %c0_i32_125 = arith.constant 0 : i32
    %128 = arith.addi %110, %c0_i32_125 : i32
    %129 = arith.index_cast %128 : i32 to index
    %c2_126 = arith.constant 2 : index
    %c0_127 = arith.constant 0 : index
    %130 = vector.load %arg8[%129, %c2_126, %c0_127] : memref<10x10x40xf32, #tpu.memory_space<vmem>>, vector<8x8x40xf32>
    %131 = vector.shape_cast %130 : vector<8x8x40xf32> to vector<64x40xf32>
    %c2_128 = arith.constant 2 : index
    %c0_129 = arith.constant 0 : index
    %c0_130 = arith.constant 0 : index
    %132 = vector.load %arg4[%c2_128, %c0_129, %c0_130] : memref<9x40x32xf32, #tpu.memory_space<vmem>>, vector<1x40x32xf32>
    %133 = vector.shape_cast %132 : vector<1x40x32xf32> to vector<40x32xf32>
    %cst_131 = arith.constant dense<0.000000e+00> : vector<64x32xf32>
    %134 = tpu.matmul %131, %133, %cst_131 {dimension_numbers = #tpu.dot_dimension_numbers<[1], [0], [0], [1], [0, 0, 1, 1], [], []>} : vector<64x40xf32>, vector<40x32xf32>, vector<64x32xf32> -> vector<64x32xf32>
    %135 = arith.addf %127, %134 : vector<64x32xf32>
    %c1_i32_132 = arith.constant 1 : i32
    %136 = arith.addi %110, %c1_i32_132 : i32
    %137 = arith.index_cast %136 : i32 to index
    %c0_133 = arith.constant 0 : index
    %c0_134 = arith.constant 0 : index
    %138 = vector.load %arg8[%137, %c0_133, %c0_134] : memref<10x10x40xf32, #tpu.memory_space<vmem>>, vector<8x8x40xf32>
    %139 = vector.shape_cast %138 : vector<8x8x40xf32> to vector<64x40xf32>
    %c3_135 = arith.constant 3 : index
    %c0_136 = arith.constant 0 : index
    %c0_137 = arith.constant 0 : index
    %140 = vector.load %arg4[%c3_135, %c0_136, %c0_137] : memref<9x40x32xf32, #tpu.memory_space<vmem>>, vector<1x40x32xf32>
    %141 = vector.shape_cast %140 : vector<1x40x32xf32> to vector<40x32xf32>
    %cst_138 = arith.constant dense<0.000000e+00> : vector<64x32xf32>
    %142 = tpu.matmul %139, %141, %cst_138 {dimension_numbers = #tpu.dot_dimension_numbers<[1], [0], [0], [1], [0, 0, 1, 1], [], []>} : vector<64x40xf32>, vector<40x32xf32>, vector<64x32xf32> -> vector<64x32xf32>
    %143 = arith.addf %135, %142 : vector<64x32xf32>
    %c1_i32_139 = arith.constant 1 : i32
    %144 = arith.addi %110, %c1_i32_139 : i32
    %145 = arith.index_cast %144 : i32 to index
    %c1_140 = arith.constant 1 : index
    %c0_141 = arith.constant 0 : index
    %146 = vector.load %arg8[%145, %c1_140, %c0_141] : memref<10x10x40xf32, #tpu.memory_space<vmem>>, vector<8x8x40xf32>
    %147 = vector.shape_cast %146 : vector<8x8x40xf32> to vector<64x40xf32>
    %c4_142 = arith.constant 4 : index
    %c0_143 = arith.constant 0 : index
    %c0_144 = arith.constant 0 : index
    %148 = vector.load %arg4[%c4_142, %c0_143, %c0_144] : memref<9x40x32xf32, #tpu.memory_space<vmem>>, vector<1x40x32xf32>
    %149 = vector.shape_cast %148 : vector<1x40x32xf32> to vector<40x32xf32>
    %cst_145 = arith.constant dense<0.000000e+00> : vector<64x32xf32>
    %150 = tpu.matmul %147, %149, %cst_145 {dimension_numbers = #tpu.dot_dimension_numbers<[1], [0], [0], [1], [0, 0, 1, 1], [], []>} : vector<64x40xf32>, vector<40x32xf32>, vector<64x32xf32> -> vector<64x32xf32>
    %151 = arith.addf %143, %150 : vector<64x32xf32>
    %c1_i32_146 = arith.constant 1 : i32
    %152 = arith.addi %110, %c1_i32_146 : i32
    %153 = arith.index_cast %152 : i32 to index
    %c2_147 = arith.constant 2 : index
    %c0_148 = arith.constant 0 : index
    %154 = vector.load %arg8[%153, %c2_147, %c0_148] : memref<10x10x40xf32, #tpu.memory_space<vmem>>, vector<8x8x40xf32>
    %155 = vector.shape_cast %154 : vector<8x8x40xf32> to vector<64x40xf32>
    %c5_149 = arith.constant 5 : index
    %c0_150 = arith.constant 0 : index
    %c0_151 = arith.constant 0 : index
    %156 = vector.load %arg4[%c5_149, %c0_150, %c0_151] : memref<9x40x32xf32, #tpu.memory_space<vmem>>, vector<1x40x32xf32>
    %157 = vector.shape_cast %156 : vector<1x40x32xf32> to vector<40x32xf32>
    %cst_152 = arith.constant dense<0.000000e+00> : vector<64x32xf32>
    %158 = tpu.matmul %155, %157, %cst_152 {dimension_numbers = #tpu.dot_dimension_numbers<[1], [0], [0], [1], [0, 0, 1, 1], [], []>} : vector<64x40xf32>, vector<40x32xf32>, vector<64x32xf32> -> vector<64x32xf32>
    %159 = arith.addf %151, %158 : vector<64x32xf32>
    %c2_i32_153 = arith.constant 2 : i32
    %160 = arith.addi %110, %c2_i32_153 : i32
    %161 = arith.index_cast %160 : i32 to index
    %c0_154 = arith.constant 0 : index
    %c0_155 = arith.constant 0 : index
    %162 = vector.load %arg8[%161, %c0_154, %c0_155] : memref<10x10x40xf32, #tpu.memory_space<vmem>>, vector<8x8x40xf32>
    %163 = vector.shape_cast %162 : vector<8x8x40xf32> to vector<64x40xf32>
    %c6_156 = arith.constant 6 : index
    %c0_157 = arith.constant 0 : index
    %c0_158 = arith.constant 0 : index
    %164 = vector.load %arg4[%c6_156, %c0_157, %c0_158] : memref<9x40x32xf32, #tpu.memory_space<vmem>>, vector<1x40x32xf32>
    %165 = vector.shape_cast %164 : vector<1x40x32xf32> to vector<40x32xf32>
    %cst_159 = arith.constant dense<0.000000e+00> : vector<64x32xf32>
    %166 = tpu.matmul %163, %165, %cst_159 {dimension_numbers = #tpu.dot_dimension_numbers<[1], [0], [0], [1], [0, 0, 1, 1], [], []>} : vector<64x40xf32>, vector<40x32xf32>, vector<64x32xf32> -> vector<64x32xf32>
    %167 = arith.addf %159, %166 : vector<64x32xf32>
    %c2_i32_160 = arith.constant 2 : i32
    %168 = arith.addi %110, %c2_i32_160 : i32
    %169 = arith.index_cast %168 : i32 to index
    %c1_161 = arith.constant 1 : index
    %c0_162 = arith.constant 0 : index
    %170 = vector.load %arg8[%169, %c1_161, %c0_162] : memref<10x10x40xf32, #tpu.memory_space<vmem>>, vector<8x8x40xf32>
    %171 = vector.shape_cast %170 : vector<8x8x40xf32> to vector<64x40xf32>
    %c7_163 = arith.constant 7 : index
    %c0_164 = arith.constant 0 : index
    %c0_165 = arith.constant 0 : index
    %172 = vector.load %arg4[%c7_163, %c0_164, %c0_165] : memref<9x40x32xf32, #tpu.memory_space<vmem>>, vector<1x40x32xf32>
    %173 = vector.shape_cast %172 : vector<1x40x32xf32> to vector<40x32xf32>
    %cst_166 = arith.constant dense<0.000000e+00> : vector<64x32xf32>
    %174 = tpu.matmul %171, %173, %cst_166 {dimension_numbers = #tpu.dot_dimension_numbers<[1], [0], [0], [1], [0, 0, 1, 1], [], []>} : vector<64x40xf32>, vector<40x32xf32>, vector<64x32xf32> -> vector<64x32xf32>
    %175 = arith.addf %167, %174 : vector<64x32xf32>
    %c2_i32_167 = arith.constant 2 : i32
    %176 = arith.addi %110, %c2_i32_167 : i32
    %177 = arith.index_cast %176 : i32 to index
    %c2_168 = arith.constant 2 : index
    %c0_169 = arith.constant 0 : index
    %178 = vector.load %arg8[%177, %c2_168, %c0_169] : memref<10x10x40xf32, #tpu.memory_space<vmem>>, vector<8x8x40xf32>
    %179 = vector.shape_cast %178 : vector<8x8x40xf32> to vector<64x40xf32>
    %c8_170 = arith.constant 8 : index
    %c0_171 = arith.constant 0 : index
    %c0_172 = arith.constant 0 : index
    %180 = vector.load %arg4[%c8_170, %c0_171, %c0_172] : memref<9x40x32xf32, #tpu.memory_space<vmem>>, vector<1x40x32xf32>
    %181 = vector.shape_cast %180 : vector<1x40x32xf32> to vector<40x32xf32>
    %cst_173 = arith.constant dense<0.000000e+00> : vector<64x32xf32>
    %182 = tpu.matmul %179, %181, %cst_173 {dimension_numbers = #tpu.dot_dimension_numbers<[1], [0], [0], [1], [0, 0, 1, 1], [], []>} : vector<64x40xf32>, vector<40x32xf32>, vector<64x32xf32> -> vector<64x32xf32>
    %183 = arith.addf %175, %182 : vector<64x32xf32>
    %c0_174 = arith.constant 0 : index
    %184 = arith.index_cast %110 : i32 to index
    %c0_175 = arith.constant 0 : index
    %c0_176 = arith.constant 0 : index
    %185 = vector.load %arg1[%c0_174, %184, %c0_175, %c0_176] : memref<1x8x8x32xf32, #tpu.memory_space<vmem>>, vector<1x8x8x32xf32>
    %186 = vector.shape_cast %185 : vector<1x8x8x32xf32> to vector<8x8x32xf32>
    %187 = vector.shape_cast %186 : vector<8x8x32xf32> to vector<64x32xf32>
    %188 = arith.addf %183, %26 : vector<64x32xf32>
    %189 = arith.addf %188, %187 : vector<64x32xf32>
    %cst_177 = arith.constant 0.000000e+00 : f32
    %190 = vector.broadcast %cst_177 : f32 to vector<64x32xf32>
    %191 = arith.maximumf %189, %190 : vector<64x32xf32>
    %192 = vector.shape_cast %191 : vector<64x32xf32> to vector<8x8x32xf32>
    %c0_178 = arith.constant 0 : index
    %193 = arith.index_cast %110 : i32 to index
    %c0_179 = arith.constant 0 : index
    %c0_180 = arith.constant 0 : index
    %194 = vector.load %arg6[%c0_178, %193, %c0_179, %c0_180] : memref<1x8x8x32xf32, #tpu.memory_space<vmem>>, vector<1x8x8x32xf32>
    %195 = vector.shape_cast %194 : vector<1x8x8x32xf32> to vector<8x8x32xf32>
    %196 = vector.shape_cast %192 : vector<8x8x32xf32> to vector<1x8x8x32xf32>
    tpu.vector_store %arg6[%c0_178, %193, %c0_179, %c0_180], %196 {strides = array<i32>} : memref<1x8x8x32xf32, #tpu.memory_space<vmem>>, vector<1x8x8x32xf32>,
    %c1_i32_181 = arith.constant 1 : i32
    return
  }
  func.func @transform_0(%arg0: i32) -> (i32, i32, i32, i32) {
    %c0_i32 = arith.constant 0 : i32
    %c0_i32_0 = arith.constant 0 : i32
    %c0_i32_1 = arith.constant 0 : i32
    %c0_i32_2 = arith.constant 0 : i32
    return %arg0, %c0_i32, %c0_i32_0, %c0_i32_1 : i32, i32, i32, i32
  }
  func.func @transform_1(%arg0: i32) -> (i32, i32, i32) {
    %c0_i32 = arith.constant 0 : i32
    %c0_i32_0 = arith.constant 0 : i32
    %c0_i32_1 = arith.constant 0 : i32
    %c0_i32_2 = arith.constant 0 : i32
    return %c0_i32, %c0_i32_0, %c0_i32_1 : i32, i32, i32
  }
  func.func @transform_2(%arg0: i32) -> (i32, i32) {
    %c0_i32 = arith.constant 0 : i32
    %c0_i32_0 = arith.constant 0 : i32
    %c0_i32_1 = arith.constant 0 : i32
    return %c0_i32, %c0_i32_0 : i32, i32
  }
  func.func @transform_3(%arg0: i32) -> (i32, i32, i32) {
    %c0_i32 = arith.constant 0 : i32
    %c0_i32_0 = arith.constant 0 : i32
    %c0_i32_1 = arith.constant 0 : i32
    %c0_i32_2 = arith.constant 0 : i32
    return %c0_i32, %c0_i32_0, %c0_i32_1 : i32, i32, i32
  }
  func.func @transform_4(%arg0: i32) -> (i32, i32) {
    %c0_i32 = arith.constant 0 : i32
    %c0_i32_0 = arith.constant 0 : i32
    %c0_i32_1 = arith.constant 0 : i32
    return %c0_i32, %c0_i32_0 : i32, i32
  }
  func.func @transform_5(%arg0: i32) -> (i32, i32, i32, i32) {
    %c0_i32 = arith.constant 0 : i32
    %c0_i32_0 = arith.constant 0 : i32
    %c0_i32_1 = arith.constant 0 : i32
    %c0_i32_2 = arith.constant 0 : i32
    return %arg0, %c0_i32, %c0_i32_0, %c0_i32_1 : i32, i32, i32, i32
  }
}

</mosaic_0001>

<bundles_post_ra>
// kernel: tpu_custom_call.1
= control target key start
LH: loop header
LB: loop body
LE: loop exit
PB: predicated region body
PF: predicated region fallthrough
CT: control target
= control target key end

     0   :  { %10 = vsyncpa [#allocation5], 0  ;;  %s5648_s0 = inlined_call_operand.vmem [shape: f32[2,8,8,32], index: 0, kind: input, shape index: {}]   ;;  %s5649_s1 = inlined_call_operand.vmem [shape: f32[9,40,32], index: 1, kind: input, shape index: {}]   ;;  %s5650_s2 = inlined_call_operand.vmem [shape: f32[1,32], index: 2, kind: input, shape index: {}]   ;;  %s5651_s3 = inlined_call_operand.vmem [shape: f32[9,40,32], index: 3, kind: input, shape index: {}]   ;;  %s5652_s4 = inlined_call_operand.vmem [shape: f32[1,32], index: 4, kind: input, shape index: {}]   ;;  %s5653_s5 = inlined_call_operand.hbm [shape: f32[2,8,8,32], index: 5, kind: output, shape index: {}]  }
   0x1   :  { %12 = vsyncpa [#allocation5 + $0x1], 0  ;;  %s4583_s18 = smov 0   ;;  %s4585_s19 = smov 0  }
   0x2   :  { %s4587_s20 = smov 0   ;;  %s4589_s21 = smov 0  }
   0x3 LB: > { %s4604_s22 = sadd.s32 4294967295, %s4546_s21   ;;  %s3299_s23 = sadd.s32 4294967294, %s4546_s21   ;;  %s4546_s21 = sphi %s4589_s21, %s5659_s21   ;;  %s4542_s20 = sphi %s4587_s20, %s5658_s20   ;;  %s4538_s19 = sphi %s4585_s19, %s5657_s19   ;;  %s4534_s18 = sphi %s4583_s18, %s5656_s18  }
   0x4   : > { %s4608_s24 = sadd.s32 1, %s4546_s21   ;;  %s135_s25 = sadd.s32 1, %s4542_s20 }
   0x5   : > { %s132_s26 = ssub.s32 %s4546_s21, %s4608_s24  ;;  %p145_p0 = scmp.ne.s32.totalorder %s4542_s20, %s4538_s19 }
   0x6   : > { %p133_p1 = scmp.eq.s32.totalorder %s132_s26, 0  ;;  %p146_p2 = scmp.eq.s32.totalorder %s4604_s22, 1 }
   0x7   : > { %p151_p3 = scmp.ne.s32.totalorder %s4538_s19, %s4534_s18  ;;  %p152_p4 = scmp.eq.s32.totalorder %s3299_s23, 1 }
   0x8   : > { %s4619_s27 = scalar_select %p133_p1, %s4542_s20, %s135_s25  }
   0x9   : > { %p4621_p5 = por %p146_p2, %p145_p0  ;;  %p4625_p6 = por %p152_p4, %p151_p3 }
   0xa   : > { %p3302_p7 = scmp.ge.s32.totalorder %s4546_s21, 1  ;;  %p190_p8 = scmp.lt.s32.totalorder %s4546_s21, 3 }
   0xc   : > { %p191_p9 = pnand %p3302_p7, %p190_p8 }
   0xd   : > { %p218_p10 = scmp.lt.s32.totalorder (!%p191_p9), %s4604_s22, 1  ;;  %v3308_v0 = vld [vmem:[%s5649_s1 + $0x28] sm:$0xff] (!%p191_p9)  ;;  %v3309_v1 = vld [vmem:[%s5649_s1 + $0x30] sm:$0xff] (!%p191_p9)  ;;  %vm230_vm0 = vcmask (!%p191_p9), 319488   ;;  %v4548_v3 = vmov (!%p191_p9), 0.0   ;;  %vm251_vm1 = vcmask (!%p191_p9), 31744  }
   0xe   : > { %194 = sbr.rel (%p191_p9) target bundleno = 992 (0x3e0), region = 40  ;;  %v4638_v2 = vpack.c.bf16 (!%p191_p9), %v3309_v1, %v3308_v0  ;;  %232 = vst.msk [vmem:[#allocation2 + $0x10] sm:$0x1] (!%p191_p9), %vm230_vm0, %v4548_v3  ;;  %242 = vst.msk [vmem:[#allocation2 + $0x19] sm:$0x1] (!%p191_p9), %vm230_vm0, %v4548_v3  ;;  %vm253_vm2 = vcmask (!%p191_p9), 25600  }
   0xf   : > { %vm273_vm3 = vcmask (!%p191_p9), 326944   ;;  %233 = vst.msk [vmem:[#allocation2 + $0x20] sm:$0x1] (!%p191_p9), %vm230_vm0, %v4548_v3  ;;  %234 = vst.msk [vmem:[#allocation2 + $0x30] sm:$0x1] (!%p191_p9), %vm230_vm0, %v4548_v3  ;;  %v3310_v4 = vld [vmem:[%s5649_s1 + $0x38] sm:$0xff] (!%p191_p9) }
  0x10   : > { %235 = vst.msk [vmem:[#allocation2 + $0x40] sm:$0x1] (!%p191_p9), %vm230_vm0, %v4548_v3  ;;  %236 = vst.msk [vmem:[#allocation2 + $0x50] sm:$0x1] (!%p191_p9), %vm230_vm0, %v4548_v3  ;;  %v3311_v5 = vld [vmem:[%s5649_s1 + $0x40] sm:$0xff] (!%p191_p9)  ;;  %vm275_vm4 = vcmask (!%p191_p9), 320800   ;;  %4170 = vmatprep.subr.bf16.mxu0 (!%p191_p9), %v4638_v2 }
  0x11   : > { %237 = vst.msk [vmem:[#allocation2 + $0x60] sm:$0x1] (!%p191_p9), %vm230_vm0, %v4548_v3  ;;  %238 = vst.msk [vmem:[#allocation2 + $0x70] sm:$0x1] (!%p191_p9), %vm230_vm0, %v4548_v3  ;;  %v4719_v6 = vpack.c.bf16 (!%p191_p9), %v3311_v5, %v3310_v4  ;;  %vm223_vm5 = vcmask (!%p191_p9), 326656   ;;  %vm225_vm6 = vcmask (!%p191_p9), 320512   ;;  %4172 = vmatpush3.bf16.msra.mxu0 (!%p191_p9), %v4638_v2 }
  0x12   : > { %239 = vst.msk [vmem:[#allocation2 + $0x80] sm:$0x1] (!%p191_p9), %vm230_vm0, %v4548_v3  ;;  %243 = vst.msk [vmem:[#allocation2 + $0x29] sm:$0x1] (!%p191_p9), %vm230_vm0, %v4548_v3  ;;  %v3312_v7 = vld [vmem:[%s5649_s1 + $0x48] sm:$0xff] (!%p191_p9)  ;;  %v434_v8 = vld [vmem:[%s5649_s1] sm:$0xff] (!%p191_p9) }
  0x13   : > { %244 = vst.msk [vmem:[#allocation2 + $0x39] sm:$0x1] (!%p191_p9), %vm230_vm0, %v4548_v3  ;;  %245 = vst.msk [vmem:[#allocation2 + $0x49] sm:$0x1] (!%p191_p9), %vm230_vm0, %v4548_v3  ;;  %4174 = vmatprep.subr.bf16.mxu0 (!%p191_p9), %v4719_v6  ;;  %v435_v11 = vld [vmem:[%s5649_s1 + $0x8] sm:$0xff] (!%p191_p9)  ;;  %s4549_s8 = smov (!%p191_p9), 4  }
  0x14   : > { %246 = vst.msk [vmem:[#allocation2 + $0x59] sm:$0x1] (!%p191_p9), %vm230_vm0, %v4548_v3  ;;  %247 = vst.msk [vmem:[#allocation2 + $0x69] sm:$0x1] (!%p191_p9), %vm230_vm0, %v4548_v3  ;;  %v4177_v14 = vpack.c.bf16 (!%p191_p9), %v435_v11, %v434_v8  ;;  %vm401_vm7 = vcmask (!%p191_p9), 293920   ;;  %v436_v24 = vld [vmem:[%s5649_s1 + $0x10] sm:$0xff] (!%p191_p9) }
  0x15   : > { %248 = vst.msk [vmem:[#allocation2 + $0x79] sm:$0x1] %vm230_vm0, %v4548_v3  ;;  %249 = vst.msk [vmem:[#allocation2 + $0x89] sm:$0x1] %vm230_vm0, %v4548_v3  ;;  %s4713_s13 = scalar_select %p218_p10, %s4604_s22, 1  ;;  %4176 = vmatpush3.bf16.msra.mxu0 %v4719_v6  ;;  %v437_v25 = vld [vmem:[%s5649_s1 + $0x18] sm:$0xff] }
  0x16   : > { %301 = vst.msk [vmem:[#allocation3 + $0x10] sm:$0x1] %vm230_vm0, %v4548_v3  ;;  %302 = vst.msk [vmem:[#allocation3 + $0x20] sm:$0x1] %vm230_vm0, %v4548_v3  ;;  %3781 = vmatprep.subr.mxu0 %v3312_v7  ;;  %v4181_v26 = vpack.c.bf16 %v437_v25, %v436_v24  ;;  %v438_v35 = vld [vmem:[%s5649_s1 + $0x20] sm:$0xff]  ;;  %v3329_v36 = vld [vmem:[%s5649_s1 + $0x50] sm:$0xff] }
  0x17   : > { %303 = vst.msk [vmem:[#allocation3 + $0x30] sm:$0x1] %vm230_vm0, %v4548_v3  ;;  %304 = vst.msk [vmem:[#allocation3 + $0x40] sm:$0x1] %vm230_vm0, %v4548_v3  ;;  %s3537_s14 = sshll.u32 %s4713_s13, 6  ;;  %v3330_v37 = vld [vmem:[%s5649_s1 + $0x58] sm:$0xff] }
  0x18   : > { %305 = vst.msk [vmem:[#allocation3 + $0x50] sm:$0x1] %vm230_vm0, %v4548_v3  ;;  %306 = vst.msk [vmem:[#allocation3 + $0x60] sm:$0x1] %vm230_vm0, %v4548_v3  ;;  %s4871_s17 = scalar_lea.vmem %s5648_s0, %s3537_s14  ;;  %v4185_v40 = vpack.c.bf16 %v3330_v37, %v3329_v36  ;;  %v3331_v43 = vld [vmem:[%s5649_s1 + $0x60] sm:$0xff]  ;;  %v3332_v44 = vld [vmem:[%s5649_s1 + $0x68] sm:$0xff] }
  0x19   : > { %307 = vst.msk [vmem:[#allocation3 + $0x70] sm:$0x1] %vm230_vm0, %v4548_v3  ;;  %308 = vst.msk [vmem:[#allocation3 + $0x80] sm:$0x1] %vm230_vm0, %v4548_v3  ;;  %v360_v9 = vld [vmem:[%s4871_s17] sm:$0xff]  ;;  %v362_v10 = vld [vmem:[%s4871_s17 + $0x10] sm:$0xff]  ;;  %3782 = vmatpush3.msra.mxu0 %v3312_v7  ;;  %v4189_v45 = vpack.c.bf16 %v3332_v44, %v3331_v43 }
  0x1a   : > { %311 = vst.msk [vmem:[#allocation3 + $0x19] sm:$0x1] %vm230_vm0, %v4548_v3  ;;  %312 = vst.msk [vmem:[#allocation3 + $0x29] sm:$0x1] %vm230_vm0, %v4548_v3  ;;  %376 = vrot.lane.b32.xlu0 %v360_v9, %s4549_s8  ;;  %380 = vrot.lane.b32.xlu1 %v362_v10, %s4549_s8  ;;  %v361_v12 = vld [vmem:[%s4871_s17 + $0x8] sm:$0xff]  ;;  %v363_v13 = vld [vmem:[%s4871_s17 + $0x18] sm:$0xff] }
  0x1b   : > { %313 = vst.msk [vmem:[#allocation3 + $0x39] sm:$0x1] %vm230_vm0, %v4548_v3  ;;  %314 = vst.msk [vmem:[#allocation3 + $0x49] sm:$0x1] %vm230_vm0, %v4548_v3  ;;  %v364_v15 = vld [vmem:[%s4871_s17 + $0x20] sm:$0xff]  ;;  %v365_v16 = vld [vmem:[%s4871_s17 + $0x28] sm:$0xff]  ;;  %4178 = vmatprep.subr.bf16.mxu0 %v4177_v14 }
  0x1c   : > { %315 = vst.msk [vmem:[#allocation3 + $0x59] sm:$0x1] %vm230_vm0, %v4548_v3  ;;  %316 = vst.msk [vmem:[#allocation3 + $0x69] sm:$0x1] %vm230_vm0, %v4548_v3  ;;  %v366_v18 = vld [vmem:[%s4871_s17 + $0x30] sm:$0xff]  ;;  %v367_v19 = vld [vmem:[%s4871_s17 + $0x38] sm:$0xff] }
  0x1d   : > { %317 = vst.msk [vmem:[#allocation3 + $0x79] sm:$0x1] %vm230_vm0, %v4548_v3  ;;  %318 = vst.msk [vmem:[#allocation3 + $0x89] sm:$0x1] %vm230_vm0, %v4548_v3  ;;  %v3333_v48 = vld [vmem:[%s5649_s1 + $0x70] sm:$0xff]  ;;  %v3342_v50 = vld [vmem:[%s5649_s1 + $0x78] sm:$0xff] }
  0x1e   : > { %255 = vst.msk [vmem:[#allocation2 + $0x10] sm:$0xff] %vm251_vm1, %v4548_v3  ;;  %257 = vst.msk [vmem:[#allocation2 + $0x20] sm:$0xff] %vm251_vm1, %v4548_v3  ;;  %378 = vrot.lane.b32.xlu0 %v361_v12, %s4549_s8  ;;  %382 = vrot.lane.b32.xlu1 %v363_v13, %s4549_s8  ;;  %v3343_v51 = vld [vmem:[%s5649_s1 + $0x80] sm:$0xff]  ;;  %v3344_v58 = vld [vmem:[%s5649_s1 + $0x88] sm:$0xff]  ;;  %s215_s25 = sand.u32 1, %s4538_s19   ;;  %vm3210_vm8 = vcmask 261120  }
  0x1f   : > { %256 = vst.msk [vmem:[#allocation2 + $0x18] sm:$0x3] %vm253_vm2, %v4548_v3  ;;  %258 = vst.msk [vmem:[#allocation2 + $0x28] sm:$0x3] %vm253_vm2, %v4548_v3  ;;  %v4193_v53 = vpack.c.bf16 %v3343_v51, %v3342_v50  ;;  %v3345_v59 = vld [vmem:[%s5649_s1 + $0x90] sm:$0xff]  ;;  %v3346_v63 = vld [vmem:[%s5649_s1 + $0x98] sm:$0xff] }
  0x20   : > { %259 = vst.msk [vmem:[#allocation2 + $0x30] sm:$0xff] %vm251_vm1, %v4548_v3  ;;  %261 = vst.msk [vmem:[#allocation2 + $0x40] sm:$0xff] %vm251_vm1, %v4548_v3  ;;  %v4197_v60 = vpack.c.bf16 %v3345_v59, %v3344_v58  ;;  %v3355_v1 = vld [vmem:[%s5649_s1 + $0xa0] sm:$0xff]  ;;  %v3356_v2 = vld [vmem:[%s5649_s1 + $0xa8] sm:$0xff]  ;;  %s3538_s7 = sshll.u32 %s4604_s22, 10  ;;  %s5607_s22 = scalar_lea.sflag [#allocation5], %s215_s25 }
  0x21   : > { %260 = vst.msk [vmem:[#allocation2 + $0x38] sm:$0x3] %vm253_vm2, %v4548_v3  ;;  %262 = vst.msk [vmem:[#allocation2 + $0x48] sm:$0x3] %vm253_vm2, %v4548_v3  ;;  %v4201_v4 = vpack.c.bf16 %v3356_v2, %v3355_v1  ;;  %v3357_v8 = vld [vmem:[%s5649_s1 + $0xb0] sm:$0xff]  ;;  %v3358_v9 = vld [vmem:[%s5649_s1 + $0xb8] sm:$0xff]  ;;  %s5597_s12 = scalar_lea.hbm %s5653_s5, %s3538_s7 }
  0x22   : > { %263 = vst.msk [vmem:[#allocation2 + $0x50] sm:$0xff] %vm251_vm1, %v4548_v3  ;;  %265 = vst.msk [vmem:[#allocation2 + $0x60] sm:$0xff] %vm251_vm1, %v4548_v3  ;;  %384 = vrot.lane.b32.xlu0 %v364_v15, %s4549_s8  ;;  %386 = vrot.lane.b32.xlu1 %v365_v16, %s4549_s8  ;;  %v4205_v10 = vpack.c.bf16 %v3358_v9, %v3357_v8  ;;  %v3359_v11 = vld [vmem:[%s5649_s1 + $0xc0] sm:$0xff]  ;;  %v3368_v12 = vld [vmem:[%s5649_s1 + $0xc8] sm:$0xff]  ;;  %s4550_s13 = smov [#allocation4]  }
  0x23   : > { %264 = vst.msk [vmem:[#allocation2 + $0x58] sm:$0x3] %vm253_vm2, %v4548_v3  ;;  %266 = vst.msk [vmem:[#allocation2 + $0x68] sm:$0x3] %vm253_vm2, %v4548_v3  ;;  %v3369_v13 = vld [vmem:[%s5649_s1 + $0xd0] sm:$0xff]  ;;  %v3370_v16 = vld [vmem:[%s5649_s1 + $0xd8] sm:$0xff] }
  0x24   : > { %267 = vst.msk [vmem:[#allocation2 + $0x70] sm:$0xff] %vm251_vm1, %v4548_v3  ;;  %269 = vst.msk [vmem:[#allocation2 + $0x80] sm:$0xff] %vm251_vm1, %v4548_v3  ;;  %v3383_v24 = vld [vmem:[%s5649_s1 + $0x100] sm:$0xff]  ;;  %v3384_v25 = vld [vmem:[%s5649_s1 + $0x108] sm:$0xff]  ;;  %s4488_s14 = sshll.u32 %s4550_s13, 4  ;;  %s4489_s14 = int_to_ptr.vmem [resolvable:$false] %s4488_s14 }
  0x25   : > { %268 = vst.msk [vmem:[#allocation2 + $0x78] sm:$0x3] %vm253_vm2, %v4548_v3  ;;  %270 = vst.msk [vmem:[#allocation2 + $0x88] sm:$0x3] %vm253_vm2, %v4548_v3  ;;  %v3397_v36 = vld [vmem:[%s5649_s1 + $0x130] sm:$0xff]  ;;  %v3408_v43 = vld [vmem:[%s5649_s1 + $0x148] sm:$0xff] }
  0x26   : > { %322 = vst.msk [vmem:[#allocation3 + $0x10] sm:$0xff] %vm251_vm1, %v4548_v3  ;;  %324 = vst.msk [vmem:[#allocation3 + $0x20] sm:$0xff] %vm251_vm1, %v4548_v3  ;;  %388 = vrot.lane.b32.xlu0 %v366_v18, %s4549_s8  ;;  %390 = vrot.lane.b32.xlu1 %v367_v19, %s4549_s8  ;;  %v3372_v19 = vld [vmem:[%s5649_s1 + $0xe8] sm:$0xff]  ;;  %v3423_v50 = vld [vmem:[%s5651_s3 + $0x40] sm:$0xff]  ;;  %s4490_s15 = scalar_lea.vmem %s4489_s14, 2048 }
  0x27   : > { %323 = vst.msk [vmem:[#allocation3 + $0x18] sm:$0x3] %vm253_vm2, %v4548_v3  ;;  %325 = vst.msk [vmem:[#allocation3 + $0x28] sm:$0x3] %vm253_vm2, %v4548_v3 }
  0x28   : > { %326 = vst.msk [vmem:[#allocation3 + $0x30] sm:$0xff] %vm251_vm1, %v4548_v3  ;;  %328 = vst.msk [vmem:[#allocation3 + $0x40] sm:$0xff] %vm251_vm1, %v4548_v3 }
  0x29   : > { %327 = vst.msk [vmem:[#allocation3 + $0x38] sm:$0x3] %vm253_vm2, %v4548_v3  ;;  %329 = vst.msk [vmem:[#allocation3 + $0x48] sm:$0x3] %vm253_vm2, %v4548_v3 }
  0x2a   : > { %330 = vst.msk [vmem:[#allocation3 + $0x50] sm:$0xff] %vm251_vm1, %v4548_v3  ;;  %332 = vst.msk [vmem:[#allocation3 + $0x60] sm:$0xff] %vm251_vm1, %v4548_v3 }
  0x2b   : > { %331 = vst.msk [vmem:[#allocation3 + $0x58] sm:$0x3] %vm253_vm2, %v4548_v3  ;;  %333 = vst.msk [vmem:[#allocation3 + $0x68] sm:$0x3] %vm253_vm2, %v4548_v3 }
  0x2c   : > { %334 = vst.msk [vmem:[#allocation3 + $0x70] sm:$0xff] %vm251_vm1, %v4548_v3  ;;  %336 = vst.msk [vmem:[#allocation3 + $0x80] sm:$0xff] %vm251_vm1, %v4548_v3 }
  0x2d   : > { %335 = vst.msk [vmem:[#allocation3 + $0x78] sm:$0x3] %vm253_vm2, %v4548_v3  ;;  %337 = vst.msk [vmem:[#allocation3 + $0x88] sm:$0x3] %vm253_vm2, %v4548_v3 }
  0x2e   : > { %277 = vst.msk [vmem:[#allocation2 + $0x10] sm:$0xff] %vm273_vm3, %v4548_v3  ;;  %279 = vst.msk [vmem:[#allocation2 + $0x20] sm:$0xff] %vm273_vm3, %v4548_v3 }
  0x2f   : > { %278 = vst.msk [vmem:[#allocation2 + $0x18] sm:$0x3] %vm275_vm4, %v4548_v3  ;;  %280 = vst.msk [vmem:[#allocation2 + $0x28] sm:$0x3] %vm275_vm4, %v4548_v3 }
  0x30   : > { %281 = vst.msk [vmem:[#allocation2 + $0x30] sm:$0xff] %vm273_vm3, %v4548_v3  ;;  %283 = vst.msk [vmem:[#allocation2 + $0x40] sm:$0xff] %vm273_vm3, %v4548_v3 }
  0x31   : > { %282 = vst.msk [vmem:[#allocation2 + $0x38] sm:$0x3] %vm275_vm4, %v4548_v3  ;;  %284 = vst.msk [vmem:[#allocation2 + $0x48] sm:$0x3] %vm275_vm4, %v4548_v3 }
  0x32   : > { %285 = vst.msk [vmem:[#allocation2 + $0x50] sm:$0xff] %vm273_vm3, %v4548_v3  ;;  %287 = vst.msk [vmem:[#allocation2 + $0x60] sm:$0xff] %vm273_vm3, %v4548_v3 }
  0x33   : > { %286 = vst.msk [vmem:[#allocation2 + $0x58] sm:$0x3] %vm275_vm4, %v4548_v3  ;;  %288 = vst.msk [vmem:[#allocation2 + $0x68] sm:$0x3] %vm275_vm4, %v4548_v3 }
  0x34   : > { %289 = vst.msk [vmem:[#allocation2 + $0x70] sm:$0xff] %vm273_vm3, %v4548_v3  ;;  %291 = vst.msk [vmem:[#allocation2 + $0x80] sm:$0xff] %vm273_vm3, %v4548_v3 }
  0x35   : > { %290 = vst.msk [vmem:[#allocation2 + $0x78] sm:$0x3] %vm275_vm4, %v4548_v3  ;;  %292 = vst.msk [vmem:[#allocation2 + $0x88] sm:$0x3] %vm275_vm4, %v4548_v3 }
  0x36   : > { %342 = vst.msk [vmem:[#allocation3 + $0x10] sm:$0xff] %vm273_vm3, %v4548_v3  ;;  %344 = vst.msk [vmem:[#allocation3 + $0x20] sm:$0xff] %vm273_vm3, %v4548_v3 }
  0x37   : > { %343 = vst.msk [vmem:[#allocation3 + $0x18] sm:$0x3] %vm275_vm4, %v4548_v3  ;;  %345 = vst.msk [vmem:[#allocation3 + $0x28] sm:$0x3] %vm275_vm4, %v4548_v3 }
  0x38   : > { %346 = vst.msk [vmem:[#allocation3 + $0x30] sm:$0xff] %vm273_vm3, %v4548_v3  ;;  %348 = vst.msk [vmem:[#allocation3 + $0x40] sm:$0xff] %vm273_vm3, %v4548_v3 }
  0x39   : > { %347 = vst.msk [vmem:[#allocation3 + $0x38] sm:$0x3] %vm275_vm4, %v4548_v3  ;;  %349 = vst.msk [vmem:[#allocation3 + $0x48] sm:$0x3] %vm275_vm4, %v4548_v3 }
  0x3a   : > { %350 = vst.msk [vmem:[#allocation3 + $0x50] sm:$0xff] %vm273_vm3, %v4548_v3  ;;  %352 = vst.msk [vmem:[#allocation3 + $0x60] sm:$0xff] %vm273_vm3, %v4548_v3 }
  0x3b   : > { %351 = vst.msk [vmem:[#allocation3 + $0x58] sm:$0x3] %vm275_vm4, %v4548_v3  ;;  %353 = vst.msk [vmem:[#allocation3 + $0x68] sm:$0x3] %vm275_vm4, %v4548_v3 }
  0x3c   : > { %354 = vst.msk [vmem:[#allocation3 + $0x70] sm:$0xff] %vm273_vm3, %v4548_v3  ;;  %356 = vst.msk [vmem:[#allocation3 + $0x80] sm:$0xff] %vm273_vm3, %v4548_v3 }
  0x3d   : > { %355 = vst.msk [vmem:[#allocation3 + $0x78] sm:$0x3] %vm275_vm4, %v4548_v3  ;;  %357 = vst.msk [vmem:[#allocation3 + $0x88] sm:$0x3] %vm275_vm4, %v4548_v3 }
  0x3e   : > { %224 = vst.msk [vmem:[#allocation2] sm:$0xff] %vm223_vm5, %v4548_v3  ;;  %228 = vst.msk [vmem:[#allocation2 + $0x90] sm:$0xff] %vm223_vm5, %v4548_v3 }
  0x3f   : > { %295 = vst.msk [vmem:[#allocation3] sm:$0xff] %vm223_vm5, %v4548_v3  ;;  %298 = vst.msk [vmem:[#allocation3 + $0x90] sm:$0xff] %vm223_vm5, %v4548_v3 }
  0x40   : > { %226 = vst.msk [vmem:[#allocation2 + $0x8] sm:$0x3] %vm225_vm6, %v4548_v3  ;;  %229 = vst.msk [vmem:[#allocation2 + $0x98] sm:$0x3] %vm225_vm6, %v4548_v3 }
  0x41   : > { %231 = vst.msk [vmem:[#allocation2] sm:$0x1] %vm230_vm0, %v4548_v3  ;;  %240 = vst.msk [vmem:[#allocation2 + $0x90] sm:$0x1] %vm230_vm0, %v4548_v3 }
  0x42   : > { %296 = vst.msk [vmem:[#allocation3 + $0x8] sm:$0x3] %vm225_vm6, %v4548_v3  ;;  %299 = vst.msk [vmem:[#allocation3 + $0x98] sm:$0x3] %vm225_vm6, %v4548_v3 }
  0x43   : > { %300 = vst.msk [vmem:[#allocation3] sm:$0x1] %vm230_vm0, %v4548_v3  ;;  %309 = vst.msk [vmem:[#allocation3 + $0x90] sm:$0x1] %vm230_vm0, %v4548_v3 }
  0x44   : > { %241 = vst.msk [vmem:[#allocation2 + $0x9] sm:$0x1] %vm230_vm0, %v4548_v3  ;;  %250 = vst.msk [vmem:[#allocation2 + $0x99] sm:$0x1] %vm230_vm0, %v4548_v3 }
  0x45   : > { %252 = vst.msk [vmem:[#allocation2] sm:$0xff] %vm251_vm1, %v4548_v3  ;;  %271 = vst.msk [vmem:[#allocation2 + $0x90] sm:$0xff] %vm251_vm1, %v4548_v3 }
  0x46   : > { %310 = vst.msk [vmem:[#allocation3 + $0x9] sm:$0x1] %vm230_vm0, %v4548_v3  ;;  %319 = vst.msk [vmem:[#allocation3 + $0x99] sm:$0x1] %vm230_vm0, %v4548_v3 }
  0x47   : > { %320 = vst.msk [vmem:[#allocation3] sm:$0xff] %vm251_vm1, %v4548_v3  ;;  %338 = vst.msk [vmem:[#allocation3 + $0x90] sm:$0xff] %vm251_vm1, %v4548_v3 }
  0x48   : > { %254 = vst.msk [vmem:[#allocation2 + $0x8] sm:$0x3] %vm253_vm2, %v4548_v3  ;;  %272 = vst.msk [vmem:[#allocation2 + $0x98] sm:$0x3] %vm253_vm2, %v4548_v3 }
  0x49   : > { %274 = vst.msk [vmem:[#allocation2] sm:$0xff] %vm273_vm3, %v4548_v3  ;;  %293 = vst.msk [vmem:[#allocation2 + $0x90] sm:$0xff] %vm273_vm3, %v4548_v3 }
  0x4a   : > { %321 = vst.msk [vmem:[#allocation3 + $0x8] sm:$0x3] %vm253_vm2, %v4548_v3  ;;  %339 = vst.msk [vmem:[#allocation3 + $0x98] sm:$0x3] %vm253_vm2, %v4548_v3 }
  0x4b   : > { %340 = vst.msk [vmem:[#allocation3] sm:$0xff] %vm273_vm3, %v4548_v3  ;;  %358 = vst.msk [vmem:[#allocation3 + $0x90] sm:$0xff] %vm273_vm3, %v4548_v3 }
  0x4c   : > { %276 = vst.msk [vmem:[#allocation2 + $0x8] sm:$0x3] %vm275_vm4, %v4548_v3  ;;  %294 = vst.msk [vmem:[#allocation2 + $0x98] sm:$0x3] %vm275_vm4, %v4548_v3 }
  0x4d   : > { %341 = vst.msk [vmem:[#allocation3 + $0x8] sm:$0x3] %vm275_vm4, %v4548_v3  ;;  %359 = vst.msk [vmem:[#allocation3 + $0x98] sm:$0x3] %vm275_vm4, %v4548_v3 }
  0x50   : > { %v426_v42 = vld [vmem:[#allocation2] sm:$0xff] }
  0x53   : > { %v439_v17 = vld [vmem:[#allocation2 + $0x1] sm:$0xff] }
  0x54   : > { %3783 = vmatprep.mubr.msk.f32.mxu0 %vm223_vm5, %v439_v17  ;;  %v711_v56 = vld [vmem:[#allocation2 + $0x2] sm:$0xff] }
  0x55   : > { %v3371_v17 = vld [vmem:[%s5649_s1 + $0xe0] sm:$0xff] }
  0x56   : > { %v4213_v18 = vpack.c.bf16 %v3371_v17, %v3370_v16 }
  0x8c   : > { %v377_v20 = vpop.permute.xlu0 %376  ;;  %v381_v21 = vpop.permute.xlu1 %380 }
  0x8d   : > { %402 = vst.msk [vmem:[#allocation2 + $0x11] sm:$0xff] %vm401_vm7, %v377_v20  ;;  %404 = vst.msk [vmem:[#allocation2 + $0x31] sm:$0xff] %vm401_vm7, %v381_v21  ;;  %v3381_v20 = vld [vmem:[%s5649_s1 + $0xf0] sm:$0xff]  ;;  %v3382_v21 = vld [vmem:[%s5649_s1 + $0xf8] sm:$0xff] }
  0x90   : > { %v379_v22 = vpop.permute.xlu0 %378  ;;  %v383_v23 = vpop.permute.xlu1 %382 }
  0x91   : > { %403 = vst.msk [vmem:[#allocation2 + $0x21] sm:$0xff] %vm401_vm7, %v379_v22  ;;  %405 = vst.msk [vmem:[#allocation2 + $0x41] sm:$0xff] %vm401_vm7, %v383_v23  ;;  %v4217_v22 = vpack.c.bf16 %v3382_v21, %v3381_v20 }
  0x94   : > { %v4951_v27 = vld [vmem:[#allocation2 + $0x11] sm:$0xff]  ;;  %v385_v28 = vpop.permute.xlu0 %384  ;;  %v387_v29 = vpop.permute.xlu1 %386 }
  0x95   : > { %3784 = vmatmul.mubr.msk.f32.vlgmr.msra.gmra.mrb[0].mxu0 %vm223_vm5, %v4951_v27  ;;  %406 = vst.msk [vmem:[#allocation2 + $0x51] sm:$0xff] %vm401_vm7, %v385_v28  ;;  %407 = vst.msk [vmem:[#allocation2 + $0x61] sm:$0xff] %vm401_vm7, %v387_v29  ;;  %v4957_v30 = vld [vmem:[#allocation2 + $0x31] sm:$0xff]  ;;  %v3395_v29 = vld [vmem:[%s5649_s1 + $0x120] sm:$0xff] }
  0x96   : > { %4180 = vmatpush3.bf16.msra.mxu0 %v4177_v14  ;;  %v427_v46 = vld [vmem:[#allocation2 + $0x10] sm:$0xff]  ;;  %v4209_v14 = vpack.c.bf16 %v3369_v13, %v3368_v12  ;;  %v3394_v28 = vld [vmem:[%s5649_s1 + $0x118] sm:$0xff] }
  0x97   : > { %4182 = vmatprep.subr.bf16.mxu0 %v4181_v26  ;;  %v5007_v49 = vld [vmem:[#allocation2 + $0x30] sm:$0xff] }
  0x98   : > { %v4959_v31 = vld [vmem:[#allocation2 + $0x21] sm:$0xff]  ;;  %v389_v32 = vpop.permute.xlu0 %388  ;;  %v391_v34 = vpop.permute.xlu1 %390  ;;  %v5040_v61 = vld [vmem:[#allocation2 + $0x12] sm:$0xff] }
  0x99   : > { %v4961_v33 = vld [vmem:[#allocation2 + $0x41] sm:$0xff]  ;;  %3786 = vmatprep.mubr.msk.f32.mxu0 %vm223_vm5, %v4959_v31  ;;  %408 = vst.msk [vmem:[#allocation2 + $0x71] sm:$0xff] %vm401_vm7, %v389_v32  ;;  %409 = vst.msk [vmem:[#allocation2 + $0x81] sm:$0xff] %vm401_vm7, %v391_v34  ;;  %v5051_v0 = vld [vmem:[#allocation2 + $0x32] sm:$0xff]  ;;  %v4225_v32 = vpack.c.bf16 %v3395_v29, %v3394_v28 }
  0x9a   : > { %3787 = vmatmul.mubr.msk.f32.gmra.mrb[2].mxu0 %vm223_vm5, %v4957_v30  ;;  %v5000_v47 = vld [vmem:[#allocation2 + $0x20] sm:$0xff] }
  0x9b   : > { %4184 = vmatpush3.bf16.msra.mxu0 %v4181_v26  ;;  %3789 = vmatprep.mubr.msk.f32.mxu0 %vm223_vm5, %v4961_v33  ;;  %v5017_v52 = vld [vmem:[#allocation2 + $0x40] sm:$0xff]  ;;  %v4221_v26 = vpack.c.bf16 %v3384_v25, %v3383_v24 }
  0x9c   : > { %v4980_v38 = vld [vmem:[#allocation2 + $0x51] sm:$0xff]  ;;  %3803 = vmatprep.subr.mxu0 %v438_v35  ;;  %v4982_v39 = vld [vmem:[#allocation2 + $0x61] sm:$0xff] }
  0x9d   : > { %v5021_v54 = vld [vmem:[#allocation2 + $0x50] sm:$0xff]  ;;  %v5025_v55 = vld [vmem:[#allocation2 + $0x60] sm:$0xff] }
  0x9e   : > { %3790 = vmatmul.mubr.msk.f32.gmra.mrb[4].mxu0 %vm223_vm5, %v4980_v38  ;;  %v5044_v62 = vld [vmem:[#allocation2 + $0x22] sm:$0xff]  ;;  %v5065_v5 = vld [vmem:[#allocation2 + $0x52] sm:$0xff] }
  0x9f   : > { %3792 = vmatprep.mubr.msk.f32.mxu0 %vm223_vm5, %v4982_v39  ;;  %3804 = vmatpush3.msra.mxu0 %v438_v35  ;;  %v5061_v3 = vld [vmem:[#allocation2 + $0x42] sm:$0xff] }
  0xa0   : > { %v4988_v41 = vld [vmem:[#allocation2 + $0x71] sm:$0xff]  ;;  %4186 = vmatprep.subr.bf16.mxu0 %v4185_v40  ;;  %v5069_v6 = vld [vmem:[#allocation2 + $0x62] sm:$0xff] }
  0xa1   : > { %v5029_v57 = vld [vmem:[#allocation2 + $0x70] sm:$0xff]  ;;  %v5105_v15 = vld [vmem:[#allocation2 + $0x80] sm:$0xff]  ;;  %v3396_v35 = vld [vmem:[%s5649_s1 + $0x128] sm:$0xff] }
  0xa2   : > { %3793 = vmatmul.mubr.msk.f32.gmra.mrb[6].mxu0 %vm223_vm5, %v4988_v41  ;;  %v5073_v7 = vld [vmem:[#allocation2 + $0x72] sm:$0xff]  ;;  %v1023_v23 = vld [vmem:[#allocation2 + $0x81] sm:$0xff]  ;;  %v4229_v37 = vpack.c.bf16 %v3397_v36, %v3396_v35 }
  0xa3   : > { %3805 = vmatprep.mubr.msk.f32.mxu0 %vm223_vm5, %v426_v42  ;;  %v1174_v34 = vld [vmem:[#allocation2 + $0x82] sm:$0xff]  ;;  %v3441_v36 = vld [vmem:[%s5651_s3 + $0x50] sm:$0xff] }
  0xa4   : > { %v3407_v42 = vld [vmem:[%s5649_s1 + $0x140] sm:$0xff] }
  0xa5   : > { %v4233_v44 = vpack.c.bf16 %v3408_v43, %v3407_v42 }
  0xa6   : > { %3806 = vmatmul.mubr.msk.f32.vlgmr.msra.gmra.mrb[0].mxu0 %vm223_vm5, %v427_v46 }
  0xa7   : > { %4188 = vmatpush3.bf16.msra.mxu0 %v4185_v40  ;;  %3808 = vmatprep.mubr.msk.f32.mxu0 %vm223_vm5, %v5000_v47  ;;  %v3398_v40 = vld [vmem:[%s5649_s1 + $0x138] sm:$0xff] }
  0xa8   : > { %4190 = vmatprep.subr.bf16.mxu0 %v4189_v45 }
  0xaa   : > { %3809 = vmatmul.mubr.msk.f32.gmra.mrb[2].mxu0 %vm223_vm5, %v5007_v49 }
  0xab   : > { %3811 = vmatprep.mubr.msk.f32.mxu0 %vm223_vm5, %v5017_v52  ;;  %4192 = vmatpush3.bf16.msra.mxu0 %v4189_v45  ;;  %v1328_v45 = vld [vmem:[#allocation2 + $0x90] sm:$0xff] }
  0xac   : > { %3825 = vmatprep.subr.mxu0 %v3333_v48 }
  0xae   : > { %3812 = vmatmul.mubr.msk.f32.gmra.mrb[4].mxu0 %vm223_vm5, %v5021_v54 }
  0xaf   : > { %3814 = vmatprep.mubr.msk.f32.mxu0 %vm223_vm5, %v5025_v55  ;;  %3826 = vmatpush3.msra.mxu0 %v3333_v48 }
  0xb0   : > { %4194 = vmatprep.subr.bf16.mxu0 %v4193_v53 }
  0xb2   : > { %3815 = vmatmul.mubr.msk.f32.gmra.mrb[6].mxu0 %vm223_vm5, %v5029_v57 }
  0xb3   : > { %3827 = vmatprep.mubr.msk.f32.mxu0 %vm223_vm5, %v711_v56  ;;  %v1840_v56 = vld [vmem:[%s5651_s3] sm:$0xff] }
  0xb6   : > { %3828 = vmatmul.mubr.msk.f32.vlgmr.msra.gmra.mrb[0].mxu0 %vm223_vm5, %v5040_v61 }
  0xb7   : > { %4196 = vmatpush3.bf16.msra.mxu0 %v4193_v53  ;;  %3830 = vmatprep.mubr.msk.f32.mxu0 %vm223_vm5, %v5044_v62  ;;  %v3306_v53 = vld [vmem:[%s5650_s2] ss:$0 sm:$0xff] }
  0xb8   : > { %4198 = vmatprep.subr.bf16.mxu0 %v4197_v60 }
  0xba   : > { %3831 = vmatmul.mubr.msk.f32.gmra.mrb[2].mxu0 %vm223_vm5, %v5051_v0 }
  0xbb   : > { %3833 = vmatprep.mubr.msk.f32.mxu0 %vm223_vm5, %v5061_v3  ;;  %4200 = vmatpush3.bf16.msra.mxu0 %v4197_v60 }
  0xbc   : > { %3847 = vmatprep.subr.mxu0 %v3346_v63 }
  0xbe   : > { %3834 = vmatmul.mubr.msk.f32.gmra.mrb[4].mxu0 %vm223_vm5, %v5065_v5 }
  0xbf   : > { %3836 = vmatprep.mubr.msk.f32.mxu0 %vm223_vm5, %v5069_v6  ;;  %3848 = vmatpush3.msra.mxu0 %v3346_v63 }
  0xc0   : > { %4202 = vmatprep.subr.bf16.mxu0 %v4201_v4 }
  0xc2   : > { %3837 = vmatmul.mubr.msk.f32.gmra.mrb[6].mxu0 %vm223_vm5, %v5073_v7 }
  0xc3   : > { %3849 = vmatprep.mubr.msk.f32.mxu0 %vm223_vm5, %v427_v46  ;;  %v3409_v46 = vld [vmem:[%s5649_s1 + $0x150] sm:$0xff] }
  0xc6   : > { %3850 = vmatmul.mubr.msk.f32.vlgmr.msra.gmra.mrb[0].mxu0 %vm223_vm5, %v5000_v47 }
  0xc7   : > { %4204 = vmatpush3.bf16.msra.mxu0 %v4201_v4  ;;  %3852 = vmatprep.mubr.msk.f32.mxu0 %vm223_vm5, %v5007_v49 }
  0xc8   : > { %4206 = vmatprep.subr.bf16.mxu0 %v4205_v10 }
  0xca   : > { %3853 = vmatmul.mubr.msk.f32.gmra.mrb[2].mxu0 %vm223_vm5, %v5017_v52 }
  0xcb   : > { %3855 = vmatprep.mubr.msk.f32.mxu0 %vm223_vm5, %v5021_v54  ;;  %4208 = vmatpush3.bf16.msra.mxu0 %v4205_v10 }
  0xcc   : > { %3869 = vmatprep.subr.mxu0 %v3359_v11 }
  0xce   : > { %3856 = vmatmul.mubr.msk.f32.gmra.mrb[4].mxu0 %vm223_vm5, %v5025_v55 }
  0xcf   : > { %3858 = vmatprep.mubr.msk.f32.mxu0 %vm223_vm5, %v5029_v57  ;;  %3870 = vmatpush3.msra.mxu0 %v3359_v11 }
  0xd0   : > { %4210 = vmatprep.subr.bf16.mxu0 %v4209_v14 }
  0xd2   : > { %3859 = vmatmul.mubr.msk.f32.gmra.mrb[6].mxu0 %vm223_vm5, %v5105_v15 }
  0xd3   : > { %3871 = vmatprep.mubr.msk.f32.mxu0 %vm223_vm5, %v4951_v27  ;;  %v3385_v27 = vld [vmem:[%s5649_s1 + $0x110] sm:$0xff] }
  0xd6   : > { %3872 = vmatmul.mubr.msk.f32.vlgmr.msra.gmra.mrb[0].mxu0 %vm223_vm5, %v4959_v31 }
  0xd7   : > { %4212 = vmatpush3.bf16.msra.mxu0 %v4209_v14  ;;  %3874 = vmatprep.mubr.msk.f32.mxu0 %vm223_vm5, %v4957_v30 }
  0xd8   : > { %4214 = vmatprep.subr.bf16.mxu0 %v4213_v18 }
  0xda   : > { %3875 = vmatmul.mubr.msk.f32.gmra.mrb[2].mxu0 %vm223_vm5, %v4961_v33 }
  0xdb   : > { %3877 = vmatprep.mubr.msk.f32.mxu0 %vm223_vm5, %v4980_v38  ;;  %4216 = vmatpush3.bf16.msra.mxu0 %v4213_v18 }
  0xdc   : > { %3891 = vmatprep.subr.mxu0 %v3372_v19 }
  0xde   : > { %3878 = vmatmul.mubr.msk.f32.gmra.mrb[4].mxu0 %vm223_vm5, %v4982_v39 }
  0xdf   : > { %3880 = vmatprep.mubr.msk.f32.mxu0 %vm223_vm5, %v4988_v41  ;;  %3892 = vmatpush3.msra.mxu0 %v3372_v19 }
  0xe0   : > { %4218 = vmatprep.subr.bf16.mxu0 %v4217_v22 }
  0xe2   : > { %3881 = vmatmul.mubr.msk.f32.gmra.mrb[6].mxu0 %vm223_vm5, %v1023_v23 }
  0xe3   : > { %3893 = vmatprep.mubr.msk.f32.mxu0 %vm223_vm5, %v5040_v61 }
  0xe6   : > { %3894 = vmatmul.mubr.msk.f32.vlgmr.msra.gmra.mrb[0].mxu0 %vm223_vm5, %v5044_v62 }
  0xe7   : > { %4220 = vmatpush3.bf16.msra.mxu0 %v4217_v22  ;;  %3896 = vmatprep.mubr.msk.f32.mxu0 %vm223_vm5, %v5051_v0  ;;  %v1842_v22 = vld [vmem:[%s5651_s3 + $0x10] sm:$0xff] }
  0xe8   : > { %4222 = vmatprep.subr.bf16.mxu0 %v4221_v26 }
  0xea   : > { %3897 = vmatmul.mubr.msk.f32.gmra.mrb[2].mxu0 %vm223_vm5, %v5061_v3 }
  0xeb   : > { %3899 = vmatprep.mubr.msk.f32.mxu0 %vm223_vm5, %v5065_v5  ;;  %4224 = vmatpush3.bf16.msra.mxu0 %v4221_v26 }
  0xec   : > { %3913 = vmatprep.subr.mxu0 %v3385_v27 }
  0xee   : > { %3900 = vmatmul.mubr.msk.f32.gmra.mrb[4].mxu0 %vm223_vm5, %v5069_v6 }
  0xef   : > { %3902 = vmatprep.mubr.msk.f32.mxu0 %vm223_vm5, %v5073_v7  ;;  %3914 = vmatpush3.msra.mxu0 %v3385_v27 }
  0xf0   : > { %4226 = vmatprep.subr.bf16.mxu0 %v4225_v32 }
  0xf2   : > { %3903 = vmatmul.mubr.msk.f32.gmra.mrb[6].mxu0 %vm223_vm5, %v1174_v34 }
  0xf3   : > { %3915 = vmatprep.mubr.msk.f32.mxu0 %vm223_vm5, %v5000_v47  ;;  %v3410_v47 = vld [vmem:[%s5649_s1 + $0x158] sm:$0xff] }
  0xf4   : > { %v4237_v48 = vpack.c.bf16 %v3410_v47, %v3409_v46  ;;  %v3443_v47 = vld [vmem:[%s5651_s3 + $0x60] sm:$0xff] }
  0xf6   : > { %3916 = vmatmul.mubr.msk.f32.vlgmr.msra.gmra.mrb[0].mxu0 %vm223_vm5, %v5007_v49  ;;  %v3411_v49 = vld [vmem:[%s5649_s1 + $0x160] sm:$0xff] }
  0xf7   : > { %4228 = vmatpush3.bf16.msra.mxu0 %v4225_v32  ;;  %3918 = vmatprep.mubr.msk.f32.mxu0 %vm223_vm5, %v5017_v52  ;;  %v3424_v52 = vld [vmem:[%s5651_s3 + $0x48] sm:$0xff]  ;;  %v1844_v32 = vld [vmem:[%s5651_s3 + $0x20] sm:$0xff] }
  0xf8   : > { %4230 = vmatprep.subr.bf16.mxu0 %v4229_v37 }
  0xfa   : > { %3919 = vmatmul.mubr.msk.f32.gmra.mrb[2].mxu0 %vm223_vm5, %v5021_v54 }
  0xfb   : > { %3921 = vmatprep.mubr.msk.f32.mxu0 %vm223_vm5, %v5025_v55  ;;  %4232 = vmatpush3.bf16.msra.mxu0 %v4229_v37  ;;  %v1845_v55 = vld [vmem:[#allocation3 + $0x1] sm:$0xff]  ;;  %v3442_v37 = vld [vmem:[%s5651_s3 + $0x58] sm:$0xff] }
  0xfc   : > { %3935 = vmatprep.subr.mxu0 %v3398_v40  ;;  %3981 = vmatprep.mubr.msk.f32.mxu1 %vm223_vm5, %v1845_v55  ;;  %v4257_v42 = vpack.c.bf16 %v3442_v37, %v3441_v36  ;;  %v3509_v36 = vld [vmem:[%s5651_s3 + $0x130] sm:$0xff] }
  0xfe   : > { %3922 = vmatmul.mubr.msk.f32.gmra.mrb[4].mxu0 %vm223_vm5, %v5029_v57  ;;  %v1841_v57 = vld [vmem:[%s5651_s3 + $0x8] sm:$0xff] }
  0xff   : > { %3924 = vmatprep.mubr.msk.f32.mxu0 %vm223_vm5, %v5105_v15  ;;  %3936 = vmatpush3.msra.mxu0 %v3398_v40  ;;  %v4249_v60 = vpack.c.bf16 %v1841_v57, %v1840_v56  ;;  %v3456_v56 = vld [vmem:[%s5651_s3 + $0x88] sm:$0xff]  ;;  %v3457_v57 = vld [vmem:[%s5651_s3 + $0x90] sm:$0xff] }
 0x100   : > { %4234 = vmatprep.subr.bf16.mxu0 %v4233_v44 }
 0x102   : > { %3925 = vmatmul.mubr.msk.f32.gmra.mrb[6].mxu0 %vm223_vm5, %v1328_v45  ;;  %v1832_v45 = vld [vmem:[#allocation3] sm:$0xff] }
 0x103   : > { %3937 = vmatprep.mubr.msk.f32.mxu0 %vm223_vm5, %v4959_v31  ;;  %v1630_v31 = vld [vmem:[#allocation2 + $0x92] sm:$0xff] }
 0x106   : > { %3938 = vmatmul.mubr.msk.f32.vlgmr.msra.gmra.mrb[0].mxu0 %vm223_vm5, %v4957_v30  ;;  %v1479_v30 = vld [vmem:[#allocation2 + $0x91] sm:$0xff] }
 0x107   : > { %4236 = vmatpush3.bf16.msra.mxu0 %v4233_v44  ;;  %3940 = vmatprep.mubr.msk.f32.mxu0 %vm223_vm5, %v4961_v33  ;;  %v3420_v33 = vld [vmem:[%s5651_s3 + $0x28] sm:$0xff] }
 0x108   : > { %4238 = vmatprep.subr.bf16.mxu0 %v4237_v48 }
 0x10a   : > { %3941 = vmatmul.mubr.msk.f32.gmra.mrb[2].mxu0 %vm223_vm5, %v4980_v38  ;;  %v3421_v38 = vld [vmem:[%s5651_s3 + $0x30] sm:$0xff] }
 0x10b   : > { %3943 = vmatprep.mubr.msk.f32.mxu0 %vm223_vm5, %v4982_v39  ;;  %4240 = vmatpush3.bf16.msra.mxu0 %v4237_v48  ;;  %v4241_v39 = vpack.c.bf16 %v3421_v38, %v3420_v33  ;;  %v3444_v48 = vld [vmem:[%s5651_s3 + $0x68] sm:$0xff]  ;;  %v3445_v33 = vld [vmem:[%s5651_s3 + $0x70] sm:$0xff] }
 0x10c   : > { %3957 = vmatprep.subr.mxu0 %v3411_v49 }
 0x10d   : > { %4242 = vmatprep.subr.bf16.mxu1 %v4241_v39 }
 0x10e   : > { %3944 = vmatmul.mubr.msk.f32.gmra.mrb[4].mxu0 %vm223_vm5, %v4988_v41  ;;  %4244 = vmatpush3.bf16.msra.mxu1 %v4241_v39  ;;  %v3422_v41 = vld [vmem:[%s5651_s3 + $0x38] sm:$0xff] }
 0x10f   : > { %3946 = vmatprep.mubr.msk.f32.mxu0 %vm223_vm5, %v1023_v23  ;;  %3958 = vmatpush3.msra.mxu0 %v3411_v49  ;;  %v4245_v51 = vpack.c.bf16 %v3423_v50, %v3422_v41  ;;  %v1843_v23 = vld [vmem:[%s5651_s3 + $0x18] sm:$0xff]  ;;  %v4261_v49 = vpack.c.bf16 %v3444_v48, %v3443_v47  ;;  %v3455_v41 = vld [vmem:[%s5651_s3 + $0x80] sm:$0xff]  ;;  %v3520_v47 = vld [vmem:[%s5651_s3 + $0x148] sm:$0xff] }
 0x110   : > { %v4253_v25 = vpack.c.bf16 %v1843_v23, %v1842_v22  ;;  %v3454_v39 = vld [vmem:[%s5651_s3 + $0x78] sm:$0xff]  ;;  %v3495_v22 = vld [vmem:[%s5651_s3 + $0x100] sm:$0xff]  ;;  %v3496_v23 = vld [vmem:[%s5651_s3 + $0x108] sm:$0xff] }
 0x111   : > { %4246 = vmatprep.subr.bf16.mxu1 %v4245_v51 }
 0x112   : > { %3947 = vmatmul.mubr.msk.f32.gmra.mrb[6].mxu0 %vm223_vm5, %v1479_v30  ;;  %4248 = vmatpush3.bf16.msra.mxu1 %v4245_v51  ;;  %v4265_v51 = vpack.c.bf16 %v3455_v41, %v3454_v39  ;;  %v3177_v41 = vld [vmem:[%s4871_s17] sm:$0xff] }
 0x113   : > { %3959 = vmatprep.mubr.msk.f32.mxu0 %vm223_vm5, %v5044_v62  ;;  %3979 = vmatprep.subr.mxu1 %v3424_v52 }
 0x116   : > { %3960 = vmatmul.mubr.msk.f32.vlgmr.msra.gmra.mrb[0].mxu0 %vm223_vm5, %v5051_v0  ;;  %3980 = vmatpush3.msra.mxu1 %v3424_v52 }
 0x117   : > { %3962 = vmatprep.mubr.msk.f32.mxu0 %vm223_vm5, %v5061_v3  ;;  %4250 = vmatprep.subr.bf16.mxu1 %v4249_v60 }
 0x11a   : > { %3963 = vmatmul.mubr.msk.f32.gmra.mrb[2].mxu0 %vm223_vm5, %v5065_v5 }
 0x11b   : > { %3965 = vmatprep.mubr.msk.f32.mxu0 %vm223_vm5, %v5069_v6 }
 0x11e   : > { %3966 = vmatmul.mubr.msk.f32.gmra.mrb[4].mxu0 %vm223_vm5, %v5073_v7 }
 0x11f   : > { %3968 = vmatprep.mubr.msk.f32.mxu0 %vm223_vm5, %v1174_v34 }
 0x122   : > { %3969 = vmatmul.mubr.msk.f32.gmra.mrb[6].mxu0 %vm223_vm5, %v1630_v31 }
 0x1e9   : > { %v3961_v54 = vpop.f32.mrb[0].mxu0 }
 0x1ea   : > { %v1775_v58 = vadd.f32 %v3961_v54, %v3306_v53  ;;  %v1727_v59 = vpop.f32.mrb[1].mxu0  ;;  %v2117_v54 = vld [vmem:[#allocation3 + $0x2] sm:$0xff] }
 0x1eb   : > { %v1774_v61 = vadd.f32 %v3306_v53, %v1727_v59 }
 0x1ec   : > { %v1783_v62 = vmax.f32 %v1775_v58, 0.0  ;;  %v4269_v58 = vpack.c.bf16 %v3457_v57, %v3456_v56 }
 0x1ed   : > { %v1782_v63 = vmax.f32 %v1774_v61, 0.0  ;;  %v3964_v0 = vpop.f32.mrb[2].mxu0  ;;  %v3458_v61 = vld [vmem:[%s5651_s3 + $0x98] sm:$0xff] }
 0x1ee   : > { %v1777_v1 = vadd.f32 %v3964_v0, %v3306_v53  ;;  %1800 = vrot.lane.b32.xlu1 %v1783_v62, %s4549_s8  ;;  %v1737_v2 = vpop.f32.mrb[3].mxu0  ;;  %v3468_v0 = vld [vmem:[%s5651_s3 + $0xa8] sm:$0xff] }
 0x1ef   : > { %v1776_v3 = vadd.f32 %v3306_v53, %v1737_v2  ;;  %1798 = vrot.lane.b32.xlu0 %v1782_v63, %s4549_s8  ;;  %v3467_v63 = vld [vmem:[%s5651_s3 + $0xa0] sm:$0xff] }
 0x1f0   : > { %v1785_v4 = vmax.f32 %v1777_v1, 0.0  ;;  %v4273_v2 = vpack.c.bf16 %v3468_v0, %v3467_v63  ;;  %v3182_v0 = vld [vmem:[%s4871_s17 + $0x28] sm:$0xff] }
 0x1f1   : > { %v1784_v5 = vmax.f32 %v1776_v3, 0.0  ;;  %v3967_v6 = vpop.f32.mrb[4].mxu0 }
 0x1f2   : > { %v1779_v7 = vadd.f32 %v3967_v6, %v3306_v53  ;;  %1804 = vrot.lane.b32.xlu1 %v1785_v4, %s4549_s8  ;;  %v1747_v8 = vpop.f32.mrb[5].mxu0  ;;  %v3469_v6 = vld [vmem:[%s5651_s3 + $0xb0] sm:$0xff] }
 0x1f3   : > { %v1778_v9 = vadd.f32 %v3306_v53, %v1747_v8  ;;  %1802 = vrot.lane.b32.xlu0 %v1784_v5, %s4549_s8 }
 0x1f4   : > { %v1787_v10 = vmax.f32 %v1779_v7, 0.0  ;;  %v3470_v7 = vld [vmem:[%s5651_s3 + $0xb8] sm:$0xff] }
 0x1f5   : > { %v1786_v11 = vmax.f32 %v1778_v9, 0.0  ;;  %v3970_v12 = vpop.f32.mrb[6].mxu0  ;;  %v4277_v8 = vpack.c.bf16 %v3470_v7, %v3469_v6  ;;  %v3471_v9 = vld [vmem:[%s5651_s3 + $0xc0] sm:$0xff] }
 0x1f6   : > { %v1781_v13 = vadd.f32 %v3970_v12, %v3306_v53  ;;  %1808 = vrot.lane.b32.xlu1 %v1787_v10, %s4549_s8  ;;  %v1757_v14 = vpop.f32.mrb[7].mxu0  ;;  %v3480_v10 = vld [vmem:[%s5651_s3 + $0xc8] sm:$0xff] }
 0x1f7   : > { %v1780_v15 = vadd.f32 %v3306_v53, %v1757_v14  ;;  %1806 = vrot.lane.b32.xlu0 %v1786_v11, %s4549_s8  ;;  %v3481_v11 = vld [vmem:[%s5651_s3 + $0xd0] sm:$0xff]  ;;  %v3482_v14 = vld [vmem:[%s5651_s3 + $0xd8] sm:$0xff] }
 0x1f8   : > { %v1789_v16 = vmax.f32 %v1781_v13, 0.0  ;;  %v4281_v12 = vpack.c.bf16 %v3481_v11, %v3480_v10  ;;  %v3184_v10 = vld [vmem:[%s4871_s17 + $0x38] sm:$0xff] }
 0x1f9   : > { %v1788_v17 = vmax.f32 %v1780_v15, 0.0  ;;  %v3483_v15 = vld [vmem:[%s5651_s3 + $0xe0] sm:$0xff] }
 0x1fa   : > { %1812 = vrot.lane.b32.xlu1 %v1789_v16, %s4549_s8  ;;  %v4285_v16 = vpack.c.bf16 %v3483_v15, %v3482_v14  ;;  %v3183_v14 = vld [vmem:[%s4871_s17 + $0x30] sm:$0xff] }
 0x1fb   : > { %1810 = vrot.lane.b32.xlu0 %v1788_v17, %s4549_s8  ;;  %v3484_v17 = vld [vmem:[%s5651_s3 + $0xe8] sm:$0xff]  ;;  %s3303_s8 = sshll.u32 %s215_s25, 6 }
 0x1fc   : > { %s5574_s6 = scalar_lea.vmem [#allocation4], %s3303_s8 }
 0x1fd   : > { %s3233_s9 = sshll.u32 %s5574_s6, 4  ;;  %s5599_s9 = int_to_ptr.vmem [resolvable:$true] %s3233_s9 }
 0x1fe   : > { %p4491_p0 = scmp.lt.s32.totalorder %s5599_s9, %s4489_s14 }
 0x260   : > { %v1801_v18 = vpop.permute.xlu1 %1800 }
 0x261   : > { %1824 = vst.msk [vmem:[#allocation3 + $0x21] sm:$0xff] %vm401_vm7, %v1801_v18  ;;  %v1799_v19 = vpop.permute.xlu0 %1798  ;;  %v3493_v18 = vld [vmem:[%s5651_s3 + $0xf0] sm:$0xff] }
 0x262   : > { %1823 = vst.msk [vmem:[#allocation3 + $0x11] sm:$0xff] %vm401_vm7, %v1799_v19  ;;  %v3494_v19 = vld [vmem:[%s5651_s3 + $0xf8] sm:$0xff] }
 0x264   : > { %v1805_v20 = vpop.permute.xlu1 %1804 }
 0x265   : > { %1826 = vst.msk [vmem:[#allocation3 + $0x41] sm:$0xff] %vm401_vm7, %v1805_v20  ;;  %v1803_v21 = vpop.permute.xlu0 %1802  ;;  %v4289_v20 = vpack.c.bf16 %v3494_v19, %v3493_v18 }
 0x266   : > { %1825 = vst.msk [vmem:[#allocation3 + $0x31] sm:$0xff] %vm401_vm7, %v1803_v21 }
 0x268   : > { %v1809_v24 = vpop.permute.xlu1 %1808  ;;  %v5285_v28 = vld [vmem:[#allocation3 + $0x21] sm:$0xff] }
 0x269   : > { %1828 = vst.msk [vmem:[#allocation3 + $0x61] sm:$0xff] %vm401_vm7, %v1809_v24  ;;  %v1807_v26 = vpop.permute.xlu0 %1806  ;;  %v5280_v27 = vld [vmem:[#allocation3 + $0x11] sm:$0xff]  ;;  %v5328_v31 = vld [vmem:[#allocation3 + $0x20] sm:$0xff]  ;;  %v4293_v24 = vpack.c.bf16 %v3496_v23, %v3495_v22 }
 0x26a   : > { %1827 = vst.msk [vmem:[#allocation3 + $0x51] sm:$0xff] %vm401_vm7, %v1807_v26  ;;  %3982 = vmatmul.mubr.msk.f32.vlgmr.msra.gmra.mrb[0].mxu1 %vm223_vm5, %v5280_v27  ;;  %v1833_v30 = vld [vmem:[#allocation3 + $0x10] sm:$0xff]  ;;  %v3506_v26 = vld [vmem:[%s5651_s3 + $0x118] sm:$0xff] }
 0x26b   : > { %4252 = vmatpush3.bf16.msra.mxu1 %v4249_v60  ;;  %3984 = vmatprep.mubr.msk.f32.mxu1 %vm223_vm5, %v5285_v28  ;;  %v5368_v59 = vld [vmem:[#allocation3 + $0x12] sm:$0xff]  ;;  %v5372_v60 = vld [vmem:[#allocation3 + $0x22] sm:$0xff] }
 0x26c   : > { %v1813_v29 = vpop.permute.xlu1 %1812  ;;  %4254 = vmatprep.subr.bf16.mxu1 %v4253_v25  ;;  %v5304_v40 = vld [vmem:[#allocation3 + $0x41] sm:$0xff] }
 0x26d   : > { %1830 = vst.msk [vmem:[#allocation3 + $0x81] sm:$0xff] %vm401_vm7, %v1813_v29  ;;  %v1811_v34 = vpop.permute.xlu0 %1810  ;;  %v5293_v35 = vld [vmem:[#allocation3 + $0x31] sm:$0xff]  ;;  %v5345_v50 = vld [vmem:[#allocation3 + $0x40] sm:$0xff] }
 0x26e   : > { %1829 = vst.msk [vmem:[#allocation3 + $0x71] sm:$0xff] %vm401_vm7, %v1811_v34  ;;  %3985 = vmatmul.mubr.msk.f32.gmra.mrb[2].mxu1 %vm223_vm5, %v5293_v35  ;;  %v5335_v38 = vld [vmem:[#allocation3 + $0x30] sm:$0xff]  ;;  %v5389_v1 = vld [vmem:[#allocation3 + $0x42] sm:$0xff] }
 0x26f   : > { %3987 = vmatprep.mubr.msk.f32.mxu1 %vm223_vm5, %v5304_v40  ;;  %4256 = vmatpush3.bf16.msra.mxu1 %v4253_v25  ;;  %v5379_v62 = vld [vmem:[#allocation3 + $0x32] sm:$0xff]  ;;  %v3508_v34 = vld [vmem:[%s5651_s3 + $0x128] sm:$0xff] }
 0x270   : > { %4001 = vmatprep.subr.mxu1 %v1844_v32  ;;  %v5312_v44 = vld [vmem:[#allocation3 + $0x61] sm:$0xff]  ;;  %v3497_v25 = vld [vmem:[%s5651_s3 + $0x110] sm:$0xff]  ;;  %v4301_v37 = vpack.c.bf16 %v3509_v36, %v3508_v34 }
 0x271   : > { %v5308_v43 = vld [vmem:[#allocation3 + $0x51] sm:$0xff]  ;;  %v5353_v53 = vld [vmem:[#allocation3 + $0x60] sm:$0xff] }
 0x272   : > { %3988 = vmatmul.mubr.msk.f32.gmra.mrb[4].mxu1 %vm223_vm5, %v5308_v43  ;;  %v5349_v52 = vld [vmem:[#allocation3 + $0x50] sm:$0xff]  ;;  %v5397_v4 = vld [vmem:[#allocation3 + $0x62] sm:$0xff] }
 0x273   : > { %3990 = vmatprep.mubr.msk.f32.mxu1 %vm223_vm5, %v5312_v44  ;;  %4002 = vmatpush3.msra.mxu1 %v1844_v32  ;;  %v5393_v3 = vld [vmem:[#allocation3 + $0x52] sm:$0xff] }
 0x274   : > { %4258 = vmatprep.subr.bf16.mxu1 %v4257_v42  ;;  %v5433_v13 = vld [vmem:[#allocation3 + $0x80] sm:$0xff] }
 0x275   : > { %v5316_v46 = vld [vmem:[#allocation3 + $0x71] sm:$0xff]  ;;  %v2426_v21 = vld [vmem:[#allocation3 + $0x81] sm:$0xff] }
 0x276   : > { %3991 = vmatmul.mubr.msk.f32.gmra.mrb[6].mxu1 %vm223_vm5, %v5316_v46  ;;  %v5357_v55 = vld [vmem:[#allocation3 + $0x70] sm:$0xff]  ;;  %v2577_v32 = vld [vmem:[#allocation3 + $0x82] sm:$0xff] }
 0x277   : > { %4003 = vmatprep.mubr.msk.f32.mxu1 %vm223_vm5, %v1832_v45  ;;  %v5401_v5 = vld [vmem:[#allocation3 + $0x72] sm:$0xff]  ;;  %v3519_v45 = vld [vmem:[%s5651_s3 + $0x140] sm:$0xff] }
 0x278   : > { %v4305_v48 = vpack.c.bf16 %v3520_v47, %v3519_v45 }
 0x27a   : > { %4004 = vmatmul.mubr.msk.f32.vlgmr.msra.gmra.mrb[0].mxu1 %vm223_vm5, %v1833_v30 }
 0x27b   : > { %4260 = vmatpush3.bf16.msra.mxu1 %v4257_v42  ;;  %4006 = vmatprep.mubr.msk.f32.mxu1 %vm223_vm5, %v5328_v31  ;;  %v3510_v42 = vld [vmem:[%s5651_s3 + $0x138] sm:$0xff] }
 0x27c   : > { %4262 = vmatprep.subr.bf16.mxu1 %v4261_v49 }
 0x27e   : > { %4007 = vmatmul.mubr.msk.f32.gmra.mrb[2].mxu1 %vm223_vm5, %v5335_v38 }
 0x27f   : > { %4009 = vmatprep.mubr.msk.f32.mxu1 %vm223_vm5, %v5345_v50  ;;  %4264 = vmatpush3.bf16.msra.mxu1 %v4261_v49  ;;  %v2729_v49 = vld [vmem:[#allocation3 + $0x90] sm:$0xff] }
 0x280   : > { %4023 = vmatprep.subr.mxu1 %v3445_v33 }
 0x282   : > { %4010 = vmatmul.mubr.msk.f32.gmra.mrb[4].mxu1 %vm223_vm5, %v5349_v52 }
 0x283   : > { %4012 = vmatprep.mubr.msk.f32.mxu1 %vm223_vm5, %v5353_v53  ;;  %4024 = vmatpush3.msra.mxu1 %v3445_v33 }
 0x284   : > { %4266 = vmatprep.subr.bf16.mxu1 %v4265_v51 }
 0x286   : > { %4013 = vmatmul.mubr.msk.f32.gmra.mrb[6].mxu1 %vm223_vm5, %v5357_v55 }
 0x287   : > { %4025 = vmatprep.mubr.msk.f32.mxu1 %vm223_vm5, %v2117_v54  ;;  %v3180_v54 = vld [vmem:[%s4871_s17 + $0x18] sm:$0xff] }
 0x28a   : > { %4026 = vmatmul.mubr.msk.f32.vlgmr.msra.gmra.mrb[0].mxu1 %vm223_vm5, %v5368_v59 }
 0x28b   : > { %4268 = vmatpush3.bf16.msra.mxu1 %v4265_v51  ;;  %4028 = vmatprep.mubr.msk.f32.mxu1 %vm223_vm5, %v5372_v60 }
 0x28c   : > { %4270 = vmatprep.subr.bf16.mxu1 %v4269_v58 }
 0x28e   : > { %4029 = vmatmul.mubr.msk.f32.gmra.mrb[2].mxu1 %vm223_vm5, %v5379_v62 }
 0x28f   : > { %4031 = vmatprep.mubr.msk.f32.mxu1 %vm223_vm5, %v5389_v1  ;;  %4272 = vmatpush3.bf16.msra.mxu1 %v4269_v58  ;;  %v3179_v58 = vld [vmem:[%s4871_s17 + $0x10] sm:$0xff] }
 0x290   : > { %4045 = vmatprep.subr.mxu1 %v3458_v61 }
 0x292   : > { %4032 = vmatmul.mubr.msk.f32.gmra.mrb[4].mxu1 %vm223_vm5, %v5393_v3 }
 0x293   : > { %4034 = vmatprep.mubr.msk.f32.mxu1 %vm223_vm5, %v5397_v4  ;;  %4046 = vmatpush3.msra.mxu1 %v3458_v61 }
 0x294   : > { %4274 = vmatprep.subr.bf16.mxu1 %v4273_v2 }
 0x296   : > { %4035 = vmatmul.mubr.msk.f32.gmra.mrb[6].mxu1 %vm223_vm5, %v5401_v5 }
 0x297   : > { %4047 = vmatprep.mubr.msk.f32.mxu1 %vm223_vm5, %v1833_v30  ;;  %v3521_v30 = vld [vmem:[%s5651_s3 + $0x150] sm:$0xff] }
 0x29a   : > { %4048 = vmatmul.mubr.msk.f32.vlgmr.msra.gmra.mrb[0].mxu1 %vm223_vm5, %v5328_v31 }
 0x29b   : > { %4276 = vmatpush3.bf16.msra.mxu1 %v4273_v2  ;;  %4050 = vmatprep.mubr.msk.f32.mxu1 %vm223_vm5, %v5335_v38 }
 0x29c   : > { %4278 = vmatprep.subr.bf16.mxu1 %v4277_v8 }
 0x29e   : > { %4051 = vmatmul.mubr.msk.f32.gmra.mrb[2].mxu1 %vm223_vm5, %v5345_v50 }
 0x29f   : > { %4053 = vmatprep.mubr.msk.f32.mxu1 %vm223_vm5, %v5349_v52  ;;  %4280 = vmatpush3.bf16.msra.mxu1 %v4277_v8 }
 0x2a0   : > { %4067 = vmatprep.subr.mxu1 %v3471_v9 }
 0x2a2   : > { %4054 = vmatmul.mubr.msk.f32.gmra.mrb[4].mxu1 %vm223_vm5, %v5353_v53 }
 0x2a3   : > { %4056 = vmatprep.mubr.msk.f32.mxu1 %vm223_vm5, %v5357_v55  ;;  %4068 = vmatpush3.msra.mxu1 %v3471_v9 }
 0x2a4   : > { %4282 = vmatprep.subr.bf16.mxu1 %v4281_v12 }
 0x2a6   : > { %4057 = vmatmul.mubr.msk.f32.gmra.mrb[6].mxu1 %vm223_vm5, %v5433_v13 }
 0x2a7   : > { %4069 = vmatprep.mubr.msk.f32.mxu1 %vm223_vm5, %v5280_v27  ;;  %v3507_v27 = vld [vmem:[%s5651_s3 + $0x120] sm:$0xff] }
 0x2a8   : > { %v4297_v29 = vpack.c.bf16 %v3507_v27, %v3506_v26 }
 0x2aa   : > { %4070 = vmatmul.mubr.msk.f32.vlgmr.msra.gmra.mrb[0].mxu1 %vm223_vm5, %v5285_v28 }
 0x2ab   : > { %4284 = vmatpush3.bf16.msra.mxu1 %v4281_v12  ;;  %4072 = vmatprep.mubr.msk.f32.mxu1 %vm223_vm5, %v5293_v35 }
 0x2ac   : > { %4286 = vmatprep.subr.bf16.mxu1 %v4285_v16 }
 0x2ae   : > { %4073 = vmatmul.mubr.msk.f32.gmra.mrb[2].mxu1 %vm223_vm5, %v5304_v40 }
 0x2af   : > { %4075 = vmatprep.mubr.msk.f32.mxu1 %vm223_vm5, %v5308_v43  ;;  %4288 = vmatpush3.bf16.msra.mxu1 %v4285_v16 }
 0x2b0   : > { %4089 = vmatprep.subr.mxu1 %v3484_v17 }
 0x2b2   : > { %4076 = vmatmul.mubr.msk.f32.gmra.mrb[4].mxu1 %vm223_vm5, %v5312_v44 }
 0x2b3   : > { %4078 = vmatprep.mubr.msk.f32.mxu1 %vm223_vm5, %v5316_v46  ;;  %4090 = vmatpush3.msra.mxu1 %v3484_v17 }
 0x2b4   : > { %4290 = vmatprep.subr.bf16.mxu1 %v4289_v20 }
 0x2b6   : > { %4079 = vmatmul.mubr.msk.f32.gmra.mrb[6].mxu1 %vm223_vm5, %v2426_v21 }
 0x2b7   : > { %4091 = vmatprep.mubr.msk.f32.mxu1 %vm223_vm5, %v5368_v59 }
 0x2ba   : > { %4092 = vmatmul.mubr.msk.f32.vlgmr.msra.gmra.mrb[0].mxu1 %vm223_vm5, %v5372_v60 }
 0x2bb   : > { %4292 = vmatpush3.bf16.msra.mxu1 %v4289_v20  ;;  %4094 = vmatprep.mubr.msk.f32.mxu1 %vm223_vm5, %v5379_v62 }
 0x2bc   : > { %4294 = vmatprep.subr.bf16.mxu1 %v4293_v24 }
 0x2be   : > { %4095 = vmatmul.mubr.msk.f32.gmra.mrb[2].mxu1 %vm223_vm5, %v5389_v1 }
 0x2bf   : > { %4097 = vmatprep.mubr.msk.f32.mxu1 %vm223_vm5, %v5393_v3  ;;  %4296 = vmatpush3.bf16.msra.mxu1 %v4293_v24 }
 0x2c0   : > { %4111 = vmatprep.subr.mxu1 %v3497_v25 }
 0x2c2   : > { %4098 = vmatmul.mubr.msk.f32.gmra.mrb[4].mxu1 %vm223_vm5, %v5397_v4 }
 0x2c3   : > { %4100 = vmatprep.mubr.msk.f32.mxu1 %vm223_vm5, %v5401_v5  ;;  %4112 = vmatpush3.msra.mxu1 %v3497_v25 }
 0x2c4   : > { %4298 = vmatprep.subr.bf16.mxu1 %v4297_v29 }
 0x2c6   : > { %4101 = vmatmul.mubr.msk.f32.gmra.mrb[6].mxu1 %vm223_vm5, %v2577_v32 }
 0x2c7   : > { %4113 = vmatprep.mubr.msk.f32.mxu1 %vm223_vm5, %v5328_v31  ;;  %v3522_v31 = vld [vmem:[%s5651_s3 + $0x158] sm:$0xff] }
 0x2c8   : > { %v4309_v33 = vpack.c.bf16 %v3522_v31, %v3521_v30 }
 0x2ca   : > { %4114 = vmatmul.mubr.msk.f32.vlgmr.msra.gmra.mrb[0].mxu1 %vm223_vm5, %v5335_v38  ;;  %v3523_v38 = vld [vmem:[%s5651_s3 + $0x160] sm:$0xff] }
 0x2cb   : > { %4300 = vmatpush3.bf16.msra.mxu1 %v4297_v29  ;;  %4116 = vmatprep.mubr.msk.f32.mxu1 %vm223_vm5, %v5345_v50 }
 0x2cc   : > { %4302 = vmatprep.subr.bf16.mxu1 %v4301_v37 }
 0x2ce   : > { %4117 = vmatmul.mubr.msk.f32.gmra.mrb[2].mxu1 %vm223_vm5, %v5349_v52 }
 0x2cf   : > { %4119 = vmatprep.mubr.msk.f32.mxu1 %vm223_vm5, %v5353_v53  ;;  %4304 = vmatpush3.bf16.msra.mxu1 %v4301_v37 }
 0x2d0   : > { %4133 = vmatprep.subr.mxu1 %v3510_v42 }
 0x2d2   : > { %4120 = vmatmul.mubr.msk.f32.gmra.mrb[4].mxu1 %vm223_vm5, %v5357_v55 }
 0x2d3   : > { %4122 = vmatprep.mubr.msk.f32.mxu1 %vm223_vm5, %v5433_v13  ;;  %4134 = vmatpush3.msra.mxu1 %v3510_v42 }
 0x2d4   : > { %4306 = vmatprep.subr.bf16.mxu1 %v4305_v48 }
 0x2d6   : > { %4123 = vmatmul.mubr.msk.f32.gmra.mrb[6].mxu1 %vm223_vm5, %v2729_v49 }
 0x2d7   : > { %4135 = vmatprep.mubr.msk.f32.mxu1 %vm223_vm5, %v5285_v28  ;;  %v2880_v28 = vld [vmem:[#allocation3 + $0x91] sm:$0xff] }
 0x2da   : > { %4136 = vmatmul.mubr.msk.f32.vlgmr.msra.gmra.mrb[0].mxu1 %vm223_vm5, %v5293_v35  ;;  %v3031_v35 = vld [vmem:[#allocation3 + $0x92] sm:$0xff] }
 0x2db   : > { %4308 = vmatpush3.bf16.msra.mxu1 %v4305_v48  ;;  %4138 = vmatprep.mubr.msk.f32.mxu1 %vm223_vm5, %v5304_v40  ;;  %v3307_v40 = vld [vmem:[%s5652_s4] ss:$0 sm:$0xff] }
 0x2dc   : > { %4310 = vmatprep.subr.bf16.mxu1 %v4309_v33 }
 0x2de   : > { %4139 = vmatmul.mubr.msk.f32.gmra.mrb[2].mxu1 %vm223_vm5, %v5308_v43 }
 0x2df   : > { %4141 = vmatprep.mubr.msk.f32.mxu1 %vm223_vm5, %v5312_v44  ;;  %4312 = vmatpush3.bf16.msra.mxu1 %v4309_v33  ;;  %v3178_v44 = vld [vmem:[%s4871_s17 + $0x8] sm:$0xff] }
 0x2e0   : > { %4155 = vmatprep.subr.mxu1 %v3523_v38 }
 0x2e2   : > { %4142 = vmatmul.mubr.msk.f32.gmra.mrb[4].mxu1 %vm223_vm5, %v5316_v46 }
 0x2e3   : > { %4144 = vmatprep.mubr.msk.f32.mxu1 %vm223_vm5, %v2426_v21  ;;  %4156 = vmatpush3.msra.mxu1 %v3523_v38 }
 0x2e6   : > { %4145 = vmatmul.mubr.msk.f32.gmra.mrb[6].mxu1 %vm223_vm5, %v2880_v28 }
 0x2e7   : > { %4157 = vmatprep.mubr.msk.f32.mxu1 %vm223_vm5, %v5372_v60 }
 0x2ea   : > { %4158 = vmatmul.mubr.msk.f32.vlgmr.msra.gmra.mrb[0].mxu1 %vm223_vm5, %v5379_v62 }
 0x2eb   : > { %4160 = vmatprep.mubr.msk.f32.mxu1 %vm223_vm5, %v5389_v1 }
 0x2ee   : > { %4161 = vmatmul.mubr.msk.f32.gmra.mrb[2].mxu1 %vm223_vm5, %v5393_v3 }
 0x2ef   : > { %4163 = vmatprep.mubr.msk.f32.mxu1 %vm223_vm5, %v5397_v4  ;;  %v3181_v4 = vld [vmem:[%s4871_s17 + $0x20] sm:$0xff]  ;;  %s4484_s17 = scalar_lea.vmem %s5599_s9, 1024 }
 0x2f0   : > { %p4485_p11 = scmp.ne.s32.totalorder %s5599_s9, %s4484_s17  ;;  %p4492_p1 = scmp.lt.s32.totalorder %s4490_s15, %s4484_s17 }
 0x2f2   : > { %4164 = vmatmul.mubr.msk.f32.gmra.mrb[4].mxu1 %vm223_vm5, %v5401_v5  ;;  %p4486_p12 = pnand %p4485_p11, %p4621_p5  ;;  %p4493_p2 = por %p4492_p1, %p4491_p0 }
 0x2f3   : > { %4166 = vmatprep.mubr.msk.f32.mxu1 %vm223_vm5, %v2577_v32 }
 0x2f4   : > { %p4487_p13 = pneg %p4486_p12 }
 0x2f6   : > { %4167 = vmatmul.mubr.msk.f32.gmra.mrb[6].mxu1 %vm223_vm5, %v3031_v35  ;;  %p4494_p3 = pnand %p4493_p2, %p4487_p13 }
 0x3bd   : > { %v4159_v43 = vpop.f32.mrb[0].mxu1 }
 0x3be   : > { %v3186_v46 = vadd.f32 %v4159_v43, %v3307_v40  ;;  %v3128_v39 = vpop.f32.mrb[1].mxu1 }
 0x3bf   : > { %v3185_v50 = vadd.f32 %v3307_v40, %v3128_v39 }
 0x3c0   : > { %v3194_v51 = vadd.f32 %v3186_v46, %v3178_v44 }
 0x3c1   : > { %v3193_v52 = vadd.f32 %v3185_v50, %v3177_v41  ;;  %v4162_v53 = vpop.f32.mrb[2].mxu1 }
 0x3c2   : > { %v3202_v55 = vmax.f32 %v3194_v51, 0.0  ;;  %v3188_v56 = vadd.f32 %v4162_v53, %v3307_v40  ;;  %v3138_v57 = vpop.f32.mrb[3].mxu1 }
 0x3c3   : > { %v3201_v59 = vmax.f32 %v3193_v52, 0.0  ;;  %v3187_v60 = vadd.f32 %v3307_v40, %v3138_v57 }
 0x3c4   : > { %3212 = vst.msk [vmem:[%s5574_s6 + $0x8] sm:$0xff] %vm3210_vm8, %v3202_v55  ;;  %v3196_v61 = vadd.f32 %v3188_v56, %v3180_v54 }
 0x3c5   : > { %3211 = vst.msk [vmem:[%s5574_s6] sm:$0xff] %vm3210_vm8, %v3201_v59  ;;  %v3195_v62 = vadd.f32 %v3187_v60, %v3179_v58  ;;  %v4165_v63 = vpop.f32.mrb[4].mxu1 }
 0x3c6   : > { %v3204_v1 = vmax.f32 %v3196_v61, 0.0  ;;  %v3190_v2 = vadd.f32 %v4165_v63, %v3307_v40  ;;  %v3148_v3 = vpop.f32.mrb[5].mxu1 }
 0x3c7   : > { %v3203_v5 = vmax.f32 %v3195_v62, 0.0  ;;  %v3189_v6 = vadd.f32 %v3307_v40, %v3148_v3 }
 0x3c8   : > { %3214 = vst.msk [vmem:[%s5574_s6 + $0x18] sm:$0xff] %vm3210_vm8, %v3204_v1  ;;  %v3198_v7 = vadd.f32 %v3190_v2, %v3182_v0 }
 0x3c9   : > { %3213 = vst.msk [vmem:[%s5574_s6 + $0x10] sm:$0xff] %vm3210_vm8, %v3203_v5  ;;  %v3197_v8 = vadd.f32 %v3189_v6, %v3181_v4  ;;  %v4168_v9 = vpop.f32.mrb[6].mxu1 }
 0x3ca   : > { %v3206_v11 = vmax.f32 %v3198_v7, 0.0  ;;  %v3192_v12 = vadd.f32 %v4168_v9, %v3307_v40  ;;  %v3158_v13 = vpop.f32.mrb[7].mxu1 }
 0x3cb   : > { %v3205_v15 = vmax.f32 %v3197_v8, 0.0  ;;  %v3191_v16 = vadd.f32 %v3307_v40, %v3158_v13 }
 0x3cc   : > { %3216 = vst.msk [vmem:[%s5574_s6 + $0x28] sm:$0xff] %vm3210_vm8, %v3206_v11  ;;  %v3200_v17 = vadd.f32 %v3192_v12, %v3184_v10 }
 0x3cd   : > { %3215 = vst.msk [vmem:[%s5574_s6 + $0x20] sm:$0xff] %vm3210_vm8, %v3205_v15  ;;  %v3199_v18 = vadd.f32 %v3191_v16, %v3183_v14 }
 0x3ce   : > { %v3208_v19 = vmax.f32 %v3200_v17, 0.0 }
 0x3cf   : > { %v3207_v20 = vmax.f32 %v3199_v18, 0.0 }
 0x3d0   : > { %3218 = vst.msk [vmem:[%s5574_s6 + $0x38] sm:$0xff] %vm3210_vm8, %v3208_v19 }
 0x3d1   : > { %3217 = vst.msk [vmem:[%s5574_s6 + $0x30] sm:$0xff] %vm3210_vm8, %v3207_v20 }
 0x3d2   : > { %4497 = shalt.err (!%p4494_p3)
}
 0x3d3   : > { %s4498_s16 = scalar_lea.hbm %s5597_s12, 1024  ;;  %s4502_s26 = scalar_lea.hbm %s5653_s5, 2048 }
 0x3d4   : > { %p4499_p4 = scmp.ne.s32.totalorder %s5597_s12, %s4498_s16  ;;  %p4503_p9 = scmp.lt.u32.totalorder %s5597_s12, %s5653_s5 }
 0x3d5   : > { %p4504_p10 = scmp.lt.u32.totalorder %s4502_s26, %s4498_s16  ;;  %p4506_p12 = scmp.lt.u32.totalorder %s4498_s16, %s5597_s12 }
 0x3d6   : > { %p4500_p7 = pnand %p4499_p4, %p4621_p5 }
 0x3d7   : > { %p4505_p11 = por %p4504_p10, %p4503_p9 }
 0x3d8   : > { %p4501_p8 = pneg %p4500_p7 }
 0x3d9   : > { %p4507_p13 = por %p4506_p12, %p4505_p11 }
 0x3db   : > { %p4508_p0 = pnand %p4507_p13, %p4501_p8 }
 0x3dd   : > { %4511 = shalt.err (!%p4508_p0)
}
 0x3de   : > { %s4551_s6 = smov 128   ;;  %s4552_s7 = smov 8  }
 0x3df   : > { %4441 = dma.vmem_to_hbm [thread:$0]  (%p4621_p5), %s5599_s9, 1024, %s5597_s12, %s5607_s22, %s4551_s6, %s4551_s6, %s4552_s7  }
 0x3e0 PF: > { %p4447_p1 = scmp.ge.s32.totalorder %s4546_s21, 2  ;;  %s3248_s10 = sand.u32 1, %s4534_s18  }
 0x3e1   : > { %s3249_s11 = scalar_lea.sflag [#allocation5], %s3248_s10 }
 0x3e2   : > { %p4444_p2 = pnand %p4447_p1, %p4625_p6 }
 0x3e4   : > { %4529 = dma.done.wait (!%p4444_p2), %s3249_s11, 1024  }
 0x3e5   : > { %4531 = vsyncadd (!%p4444_p2), %s3249_s11, 4294966272  ;;  %p15_p3 = scmp.ge.s32.totalorder %s4608_s24, 4   ;;  %s5656_s18 = smov %s4538_s19 }
 0x3e6   : > { %s5657_s19 = smov %s4542_s20  ;;  %s5658_s20 = smov %s4619_s27 }
 0x3e7   : > { %s5659_s21 = smov %s4608_s24  ;;  %17 = sbr.rel (!%p15_p3) target bundleno = 3 (0x3), region = 102 }
 0x3ee   :  { %3254 = vsyncpa [#allocation5], 1 }
 0x3ef   :  { %3256 = vsyncpa [#allocation5 + $0x1], 1 }

</bundles_post_ra>
